<compile_context>
chip_gen: v5e
topology: v5e:2x2
jax: 0.10.0
libtpu: 0.0.40
codegen_flags: <defaults>
</compile_context>

<pallas_src>
import jax
import jax.numpy as jnp
from jax import lax
from jax.experimental import pallas as pl
from jax.experimental.pallas import tpu as pltpu

# ----- small, deterministic problem sizes -----
B, L, LC = 2, 16, 24       # batch, decoder seq len, cross (encoder) seq len
D, DFF, C = 32, 64, 8      # d_model, d_ff, c_out
NL = 2                     # number of decoder layers
EPS = 1e-5
BL = B * L                 # folded batch*seq rows (32)
CROSS_PAD = 64             # B*LC = 48 rows, padded to 64

# ---- packed `data` slab row offsets (lane width D) ----
R_X = 0
R_CROSS = BL                       # 32
R_TREND = BL + CROSS_PAD           # 96
DATA_ROWS = BL + CROSS_PAD + BL    # 128

# ---- packed `w32` slab row offsets (lane width D) ----
R_WSELF = 0                        # NL*D   rows
R_WFF2 = R_WSELF + NL * D          # 64  (NL*DFF rows)
R_A = R_WFF2 + NL * DFF            # 192 (BL rows)  replicate-edge moving-average op
R_PPREV = R_A + BL                 # 224 (BL rows)  per-batch circular shift +1
R_PNEXT = R_PPREV + BL             # 256 (BL rows)  per-batch circular shift -1
R_MSUB = R_PNEXT + BL              # 288 (BL rows)  I - per-batch sequence mean
R_WTREND = R_MSUB + BL             # 320 (NL*3*D rows, C lanes live)
R_WPROJ = R_WTREND + NL * 3 * D    # 512 (D rows, C lanes live)
R_VEC = R_WPROJ + D                # 544 (ln_g, ln_b, bproj rows)
W32_ROWS = 552                     # 547 real rows padded to a sublane multiple

# ---- packed `w64` slab row offsets (lane width 2*D) ----
R_WCROSS = 0                       # D rows
R_WFF1 = R_WCROSS + D              # 32  (NL*D rows)
R_MPOOL = R_WFF1 + NL * D          # 96  (BL rows) cross-sequence mean-pool op
W64_ROWS = R_MPOOL + BL            # 128


def decoder_kernel(data_ref, w64_ref, w32_ref, out_ref):
    f32 = jnp.float32

    x = data_ref[R_X:R_X + BL, :]                          # (BL, D)
    cross2 = data_ref[R_CROSS:R_CROSS + CROSS_PAD, :]      # (CROSS_PAD, D), tail rows 0
    trend = data_ref[R_TREND:R_TREND + BL, :]              # (BL, D), lanes >= C are 0

    # block-diagonal operators (applied on the MXU; replaces rolls / masked selects)
    A = w32_ref[R_A:R_A + BL, :]            # replicate-edge kernel-3 moving average
    Pp = w32_ref[R_PPREV:R_PPREV + BL, :]   # per-batch circular shift by +1
    Pn = w32_ref[R_PNEXT:R_PNEXT + BL, :]   # per-batch circular shift by -1

    # ---- hoisted cross-mix for all NL layers: one matmul + one pooling matmul ----
    cmix = jnp.tanh(jnp.dot(cross2, w64_ref[R_WCROSS:R_WCROSS + D, :],
                            preferred_element_type=f32))            # (CROSS_PAD, NL*D)
    cpool = jnp.dot(w64_ref[R_MPOOL:R_MPOOL + BL, :], cmix,
                    preferred_element_type=f32)                      # (BL, NL*D)

    for l in range(NL):    # static, unrolled layer loop
        wself_l = w32_ref[R_WSELF + l * D:R_WSELF + (l + 1) * D, :]
        wff1_l = w64_ref[R_WFF1 + l * D:R_WFF1 + (l + 1) * D, :]
        wff2_l = w32_ref[R_WFF2 + l * DFF:R_WFF2 + (l + 1) * DFF, :]

        # self-mix + series decomposition 1
        x = x + jnp.tanh(jnp.dot(x, wself_l, preferred_element_type=f32))
        t1 = jnp.dot(A, x, preferred_element_type=f32)
        x = x - t1

        # pooled cross-mix + series decomposition 2
        x = x + cpool[:, l * D:(l + 1) * D]
        t2 = jnp.dot(A, x, preferred_element_type=f32)
        x = x - t2

        # feed-forward + series decomposition 3
        y = jnp.maximum(jnp.dot(x, wff1_l, preferred_element_type=f32), 0.0)
        y = jnp.dot(y, wff2_l, preferred_element_type=f32)
        x = x + y
        t3 = jnp.dot(A, x, preferred_element_type=f32)
        x = x - t3

        # residual trend: Conv1d(D->C, kernel=3, circular, no bias) as three K=D
        # matmuls; circular taps via the per-batch shift operators (no lane concat).
        tin = t1 + t2 + t3
        r0 = R_WTREND + (l * 3) * D
        w_k0 = w32_ref[r0:r0 + D, :]
        w_k1 = w32_ref[r0 + D:r0 + 2 * D, :]
        w_k2 = w32_ref[r0 + 2 * D:r0 + 3 * D, :]
        rtrend = (jnp.dot(Pp, jnp.dot(tin, w_k0, preferred_element_type=f32),
                          preferred_element_type=f32)
                  + jnp.dot(tin, w_k1, preferred_element_type=f32)
                  + jnp.dot(Pn, jnp.dot(tin, w_k2, preferred_element_type=f32),
                            preferred_element_type=f32))
        trend = trend + rtrend                 # Decoder trend accumulation

    # my_Layernorm: LayerNorm over D, then subtract per-batch sequence mean (MXU op)
    ln_g = w32_ref[R_VEC:R_VEC + 1, :]
    ln_b = w32_ref[R_VEC + 1:R_VEC + 2, :]
    bproj = w32_ref[R_VEC + 2:R_VEC + 3, :]
    mu = jnp.mean(x, axis=-1, keepdims=True)
    var = jnp.mean((x - mu) ** 2, axis=-1, keepdims=True)
    xn = (x - mu) * lax.rsqrt(var + EPS) * ln_g + ln_b
    xn = jnp.dot(w32_ref[R_MSUB:R_MSUB + BL, :], xn, preferred_element_type=f32)

    # projection Linear(D -> C); pad lanes stay zero (zero-padded wproj/bproj)
    xo = jnp.dot(xn, w32_ref[R_WPROJ:R_WPROJ + D, :],
                 preferred_element_type=f32) + bproj

    # single output slab, two disjoint row-range stores (no in-kernel concat)
    out_ref[0:BL, :] = xo
    out_ref[BL:2 * BL, :] = trend


def _pack_data(x, cross, trend):
    x2 = x.reshape(BL, D)
    cross2 = jnp.pad(cross.reshape(B * LC, D), ((0, CROSS_PAD - B * LC), (0, 0)))
    trend_pad = jnp.pad(trend.reshape(BL, C), ((0, 0), (0, D - C)))
    return jnp.concatenate([x2, cross2, trend_pad], axis=0)          # (128, 32)


def _pack_weights(params):
    wself, wcross, wff1, wff2, wtrend, ln_g, ln_b, wproj, bproj = params
    f32 = jnp.float32

    # ---- block-diagonal operator matrices (built once, wrapper/XLA side) ----
    idx = jnp.arange(L)
    eyeL = jnp.eye(L, dtype=f32)
    A_L = (eyeL[jnp.clip(idx - 1, 0, L - 1)] + eyeL
           + eyeL[jnp.clip(idx + 1, 0, L - 1)]) / 3.0                # replicate-edge MA
    Pp_L = eyeL[(idx - 1) % L]                                       # == roll(v, +1)
    Pn_L = eyeL[(idx + 1) % L]                                       # == roll(v, -1)
    eyeB = jnp.eye(B, dtype=f32)
    A = jnp.kron(eyeB, A_L)
    Pp = jnp.kron(eyeB, Pp_L)
    Pn = jnp.kron(eyeB, Pn_L)
    Msub = jnp.eye(BL, dtype=f32) - jnp.kron(eyeB, jnp.ones((L, L), f32) / L)
    Mpool = jnp.kron(eyeB, jnp.ones((L, LC), f32) / LC)              # (BL, B*LC)
    Mpool = jnp.pad(Mpool, ((0, 0), (0, CROSS_PAD - B * LC)))        # (BL, 64)

    pad_c = lambda m: jnp.pad(m, ((0, 0), (0, D - C)))

    # ---- w32 slab (lane width D) ----
    w32 = jnp.concatenate([
        wself.reshape(NL * D, D),                  # R_WSELF
        wff2.reshape(NL * DFF, D),                 # R_WFF2
        A, Pp, Pn, Msub,                           # R_A / R_PPREV / R_PNEXT / R_MSUB
        pad_c(wtrend.reshape(NL * 3 * D, C)),      # R_WTREND
        pad_c(wproj),                              # R_WPROJ
        ln_g, ln_b, pad_c(bproj),                  # R_VEC
    ], axis=0)
    w32 = jnp.pad(w32, ((0, W32_ROWS - w32.shape[0]), (0, 0)))       # (552, 32)

    # ---- w64 slab (lane width 2*D) ----
    wcross_all = jnp.transpose(wcross, (1, 0, 2)).reshape(D, NL * D)  # (32, 64)
    w64 = jnp.concatenate([
        wcross_all,                                # R_WCROSS
        wff1.reshape(NL * D, DFF),                 # R_WFF1
        Mpool,                                     # R_MPOOL
    ], axis=0)                                     # (128, 64)
    return w32, w64


def decoder_forward(x, cross, trend, params):
    data = _pack_data(x, cross, trend)
    w32, w64 = _pack_weights(params)

    grid_spec = pltpu.PrefetchScalarGridSpec(
        num_scalar_prefetch=0,
        grid=(1,),    # single invocation; see TODO(synk) above for v7x dual-TC split
        in_specs=[
            pl.BlockSpec((DATA_ROWS, D), lambda i: (0, 0)),
            pl.BlockSpec((W64_ROWS, 2 * D), lambda i: (0, 0)),
            pl.BlockSpec((W32_ROWS, D), lambda i: (0, 0)),
        ],
        out_specs=pl.BlockSpec((2 * BL, D), lambda i: (0, 0)),
    )
    out = pl.pallas_call(
        decoder_kernel,
        out_shape=jax.ShapeDtypeStruct((2 * BL, D), jnp.float32),
        grid_spec=grid_spec,
        compiler_params=pltpu.CompilerParams(dimension_semantics=("arbitrary",)),
    )(data, w64, w32)

    out_x = out[:BL, :C].reshape(B, L, C)
    out_trend = out[BL:, :C].reshape(B, L, C)
    return out_x, out_trend


# ---------------- pure-JAX reference (same math) ----------------
def _ref_ma3(x):
    left = jnp.concatenate([x[:1], x[:-1]], axis=0)
    right = jnp.concatenate([x[1:], x[-1:]], axis=0)
    return (left + x + right) / 3.0


def ref_decoder(x, cross, trend, params):
    wself, wcross, wff1, wff2, wtrend, ln_g, ln_b, wproj, bproj = params
    wtrend = wtrend.reshape(NL, 3, D, C)
    outs_x, outs_t = [], []
    for b in range(B):
        xb, cb, tb = x[b], cross[b], trend[b]
        for l in range(NL):
            xb = xb + jnp.tanh(xb @ wself[l])
            t1 = _ref_ma3(xb); xb = xb - t1
            cpool = jnp.mean(jnp.tanh(cb @ wcross[l]), axis=0, keepdims=True)
            xb = xb + cpool
            t2 = _ref_ma3(xb); xb = xb - t2
            y = jnp.maximum(xb @ wff1[l], 0.0) @ wff2[l]
            xb = xb + y
            t3 = _ref_ma3(xb); xb = xb - t3
            tin = t1 + t2 + t3
            rt = jnp.zeros((L, C), jnp.float32)
            for k in range(3):
                rt = rt + jnp.roll(tin, shift=(1 - k), axis=0) @ wtrend[l, k]
            tb = tb + rt
        mu = xb.mean(-1, keepdims=True)
        var = ((xb - mu) ** 2).mean(-1, keepdims=True)
        xn = (xb - mu) / jnp.sqrt(var + EPS) * ln_g + ln_b
        xn = xn - xn.mean(0, keepdims=True)
        outs_x.append(xn @ wproj + bproj)
        outs_t.append(tb)
    return jnp.stack(outs_x), jnp.stack(outs_t)


if __name__ == "__main__":
    key = jax.random.PRNGKey(0)
    ks = jax.random.split(key, 10)
    x = jax.random.normal(ks[0], (B, L, D), jnp.float32)
    cross = jax.random.normal(ks[1], (B, LC, D), jnp.float32)
    trend0 = jax.random.normal(ks[2], (B, L, C), jnp.float32)

    params = (
        0.1 * jax.random.normal(ks[3], (NL, D, D), jnp.float32),
        0.1 * jax.random.normal(ks[4], (NL, D, D), jnp.float32),
        0.1 * jax.random.normal(ks[5], (NL, D, DFF), jnp.float32),
        0.1 * jax.random.normal(ks[6], (NL, DFF, D), jnp.float32),
        0.1 * jax.random.normal(ks[7], (NL * 3, D, C), jnp.float32),
        jnp.ones((1, D), jnp.float32),    # LayerNorm gamma
        jnp.zeros((1, D), jnp.float32),   # LayerNorm beta
        0.1 * jax.random.normal(ks[8], (D, C), jnp.float32),
        jnp.zeros((1, C), jnp.float32),   # projection bias
    )

    out_x, out_trend = decoder_forward(x, cross, trend0, params)
    jax.block_until_ready((out_x, out_trend))

    ref_x, ref_trend = ref_decoder(x, cross, trend0, params)
    assert jnp.allclose(out_x, ref_x, atol=5e-4, rtol=5e-4), \
        float(jnp.max(jnp.abs(out_x - ref_x)))
    assert jnp.allclose(out_trend, ref_trend, atol=5e-4, rtol=5e-4), \
        float(jnp.max(jnp.abs(out_trend - ref_trend)))
    print("KERNEL_OK")
</pallas_src>

<mosaic_0001>
module attributes {stable_mosaic.version = 11 : i64} {
  func.func @decoder_kernel(%arg0: i32, %arg1: memref<128x32xf32, #tpu.memory_space<vmem>>, %arg2: memref<128x64xf32, #tpu.memory_space<vmem>>, %arg3: memref<552x32xf32, #tpu.memory_space<vmem>>, %arg4: memref<64x32xf32, #tpu.memory_space<vmem>>) attributes {dimension_semantics = [#tpu.dimension_semantics<arbitrary>], iteration_bounds = array<i64: 1>, scalar_prefetch = 0 : i64, scratch_operands = 0 : i64, tpu.core_type = #tpu.core_type<tc>, window_params = [{pipeline_mode = #tpu.pipeline_mode<synchronous>, transform_indices = @transform_0, window_bounds = array<i64: 128, 32>}, {pipeline_mode = #tpu.pipeline_mode<synchronous>, transform_indices = @transform_1, window_bounds = array<i64: 128, 64>}, {pipeline_mode = #tpu.pipeline_mode<synchronous>, transform_indices = @transform_2, window_bounds = array<i64: 552, 32>}, {pipeline_mode = #tpu.pipeline_mode<synchronous>, transform_indices = @transform_3, window_bounds = array<i64: 64, 32>}]} {
    %c0 = arith.constant 0 : index
    %c0_0 = arith.constant 0 : index
    %0 = vector.load %arg1[%c0, %c0_0] : memref<128x32xf32, #tpu.memory_space<vmem>>, vector<32x32xf32>
    %c32 = arith.constant 32 : index
    %c0_1 = arith.constant 0 : index
    %1 = vector.load %arg1[%c32, %c0_1] : memref<128x32xf32, #tpu.memory_space<vmem>>, vector<64x32xf32>
    %c96 = arith.constant 96 : index
    %c0_2 = arith.constant 0 : index
    %2 = vector.load %arg1[%c96, %c0_2] : memref<128x32xf32, #tpu.memory_space<vmem>>, vector<32x32xf32>
    %c192 = arith.constant 192 : index
    %c0_3 = arith.constant 0 : index
    %3 = vector.load %arg3[%c192, %c0_3] : memref<552x32xf32, #tpu.memory_space<vmem>>, vector<32x32xf32>
    %c224 = arith.constant 224 : index
    %c0_4 = arith.constant 0 : index
    %4 = vector.load %arg3[%c224, %c0_4] : memref<552x32xf32, #tpu.memory_space<vmem>>, vector<32x32xf32>
    %c256 = arith.constant 256 : index
    %c0_5 = arith.constant 0 : index
    %5 = vector.load %arg3[%c256, %c0_5] : memref<552x32xf32, #tpu.memory_space<vmem>>, vector<32x32xf32>
    %c0_6 = arith.constant 0 : index
    %c0_7 = arith.constant 0 : index
    %6 = vector.load %arg2[%c0_6, %c0_7] : memref<128x64xf32, #tpu.memory_space<vmem>>, vector<32x64xf32>
    %cst = arith.constant dense<0.000000e+00> : vector<64x64xf32>
    %7 = tpu.matmul %1, %6, %cst {dimension_numbers = #tpu.dot_dimension_numbers<[1], [0], [0], [1], [0, 0, 1, 1], [], []>} : vector<64x32xf32>, vector<32x64xf32>, vector<64x64xf32> -> vector<64x64xf32>
    %8 = math.tanh %7 : vector<64x64xf32>
    %c96_8 = arith.constant 96 : index
    %c0_9 = arith.constant 0 : index
    %9 = vector.load %arg2[%c96_8, %c0_9] : memref<128x64xf32, #tpu.memory_space<vmem>>, vector<32x64xf32>
    %cst_10 = arith.constant dense<0.000000e+00> : vector<32x64xf32>
    %10 = tpu.matmul %9, %8, %cst_10 {dimension_numbers = #tpu.dot_dimension_numbers<[1], [0], [0], [1], [0, 0, 1, 1], [], []>} : vector<32x64xf32>, vector<64x64xf32>, vector<32x64xf32> -> vector<32x64xf32>
    %c0_11 = arith.constant 0 : index
    %c0_12 = arith.constant 0 : index
    %11 = vector.load %arg3[%c0_11, %c0_12] : memref<552x32xf32, #tpu.memory_space<vmem>>, vector<32x32xf32>
    %c32_13 = arith.constant 32 : index
    %c0_14 = arith.constant 0 : index
    %12 = vector.load %arg2[%c32_13, %c0_14] : memref<128x64xf32, #tpu.memory_space<vmem>>, vector<32x64xf32>
    %c64 = arith.constant 64 : index
    %c0_15 = arith.constant 0 : index
    %13 = vector.load %arg3[%c64, %c0_15] : memref<552x32xf32, #tpu.memory_space<vmem>>, vector<64x32xf32>
    %cst_16 = arith.constant dense<0.000000e+00> : vector<32x32xf32>
    %14 = tpu.matmul %0, %11, %cst_16 {dimension_numbers = #tpu.dot_dimension_numbers<[1], [0], [0], [1], [0, 0, 1, 1], [], []>} : vector<32x32xf32>, vector<32x32xf32>, vector<32x32xf32> -> vector<32x32xf32>
    %15 = math.tanh %14 : vector<32x32xf32>
    %16 = arith.addf %0, %15 : vector<32x32xf32>
    %cst_17 = arith.constant dense<0.000000e+00> : vector<32x32xf32>
    %17 = tpu.matmul %3, %16, %cst_17 {dimension_numbers = #tpu.dot_dimension_numbers<[1], [0], [0], [1], [0, 0, 1, 1], [], []>} : vector<32x32xf32>, vector<32x32xf32>, vector<32x32xf32> -> vector<32x32xf32>
    %18 = arith.subf %16, %17 : vector<32x32xf32>
    %19 = vector.extract_strided_slice %10 {offsets = [0, 0], sizes = [32, 32], strides = [1, 1]} : vector<32x64xf32> to vector<32x32xf32>
    %20 = arith.addf %18, %19 : vector<32x32xf32>
    %cst_18 = arith.constant dense<0.000000e+00> : vector<32x32xf32>
    %21 = tpu.matmul %3, %20, %cst_18 {dimension_numbers = #tpu.dot_dimension_numbers<[1], [0], [0], [1], [0, 0, 1, 1], [], []>} : vector<32x32xf32>, vector<32x32xf32>, vector<32x32xf32> -> vector<32x32xf32>
    %22 = arith.subf %20, %21 : vector<32x32xf32>
    %cst_19 = arith.constant dense<0.000000e+00> : vector<32x64xf32>
    %23 = tpu.matmul %22, %12, %cst_19 {dimension_numbers = #tpu.dot_dimension_numbers<[1], [0], [0], [1], [0, 0, 1, 1], [], []>} : vector<32x32xf32>, vector<32x64xf32>, vector<32x64xf32> -> vector<32x64xf32>
    %cst_20 = arith.constant 0.000000e+00 : f32
    %24 = vector.broadcast %cst_20 : f32 to vector<32x64xf32>
    %25 = arith.maximumf %23, %24 : vector<32x64xf32>
    %cst_21 = arith.constant dense<0.000000e+00> : vector<32x32xf32>
    %26 = tpu.matmul %25, %13, %cst_21 {dimension_numbers = #tpu.dot_dimension_numbers<[1], [0], [0], [1], [0, 0, 1, 1], [], []>} : vector<32x64xf32>, vector<64x32xf32>, vector<32x32xf32> -> vector<32x32xf32>
    %27 = arith.addf %22, %26 : vector<32x32xf32>
    %cst_22 = arith.constant dense<0.000000e+00> : vector<32x32xf32>
    %28 = tpu.matmul %3, %27, %cst_22 {dimension_numbers = #tpu.dot_dimension_numbers<[1], [0], [0], [1], [0, 0, 1, 1], [], []>} : vector<32x32xf32>, vector<32x32xf32>, vector<32x32xf32> -> vector<32x32xf32>
    %29 = arith.subf %27, %28 : vector<32x32xf32>
    %30 = arith.addf %17, %21 : vector<32x32xf32>
    %31 = arith.addf %30, %28 : vector<32x32xf32>
    %c320 = arith.constant 320 : index
    %c0_23 = arith.constant 0 : index
    %32 = vector.load %arg3[%c320, %c0_23] : memref<552x32xf32, #tpu.memory_space<vmem>>, vector<32x32xf32>
    %c352 = arith.constant 352 : index
    %c0_24 = arith.constant 0 : index
    %33 = vector.load %arg3[%c352, %c0_24] : memref<552x32xf32, #tpu.memory_space<vmem>>, vector<32x32xf32>
    %c384 = arith.constant 384 : index
    %c0_25 = arith.constant 0 : index
    %34 = vector.load %arg3[%c384, %c0_25] : memref<552x32xf32, #tpu.memory_space<vmem>>, vector<32x32xf32>
    %cst_26 = arith.constant dense<0.000000e+00> : vector<32x32xf32>
    %35 = tpu.matmul %31, %32, %cst_26 {dimension_numbers = #tpu.dot_dimension_numbers<[1], [0], [0], [1], [0, 0, 1, 1], [], []>} : vector<32x32xf32>, vector<32x32xf32>, vector<32x32xf32> -> vector<32x32xf32>
    %cst_27 = arith.constant dense<0.000000e+00> : vector<32x32xf32>
    %36 = tpu.matmul %4, %35, %cst_27 {dimension_numbers = #tpu.dot_dimension_numbers<[1], [0], [0], [1], [0, 0, 1, 1], [], []>} : vector<32x32xf32>, vector<32x32xf32>, vector<32x32xf32> -> vector<32x32xf32>
    %cst_28 = arith.constant dense<0.000000e+00> : vector<32x32xf32>
    %37 = tpu.matmul %31, %33, %cst_28 {dimension_numbers = #tpu.dot_dimension_numbers<[1], [0], [0], [1], [0, 0, 1, 1], [], []>} : vector<32x32xf32>, vector<32x32xf32>, vector<32x32xf32> -> vector<32x32xf32>
    %38 = arith.addf %36, %37 : vector<32x32xf32>
    %cst_29 = arith.constant dense<0.000000e+00> : vector<32x32xf32>
    %39 = tpu.matmul %31, %34, %cst_29 {dimension_numbers = #tpu.dot_dimension_numbers<[1], [0], [0], [1], [0, 0, 1, 1], [], []>} : vector<32x32xf32>, vector<32x32xf32>, vector<32x32xf32> -> vector<32x32xf32>
    %cst_30 = arith.constant dense<0.000000e+00> : vector<32x32xf32>
    %40 = tpu.matmul %5, %39, %cst_30 {dimension_numbers = #tpu.dot_dimension_numbers<[1], [0], [0], [1], [0, 0, 1, 1], [], []>} : vector<32x32xf32>, vector<32x32xf32>, vector<32x32xf32> -> vector<32x32xf32>
    %41 = arith.addf %38, %40 : vector<32x32xf32>
    %42 = arith.addf %2, %41 : vector<32x32xf32>
    %c32_31 = arith.constant 32 : index
    %c0_32 = arith.constant 0 : index
    %43 = vector.load %arg3[%c32_31, %c0_32] : memref<552x32xf32, #tpu.memory_space<vmem>>, vector<32x32xf32>
    %c64_33 = arith.constant 64 : index
    %c0_34 = arith.constant 0 : index
    %44 = vector.load %arg2[%c64_33, %c0_34] : memref<128x64xf32, #tpu.memory_space<vmem>>, vector<32x64xf32>
    %c128 = arith.constant 128 : index
    %c0_35 = arith.constant 0 : index
    %45 = vector.load %arg3[%c128, %c0_35] : memref<552x32xf32, #tpu.memory_space<vmem>>, vector<64x32xf32>
    %cst_36 = arith.constant dense<0.000000e+00> : vector<32x32xf32>
    %46 = tpu.matmul %29, %43, %cst_36 {dimension_numbers = #tpu.dot_dimension_numbers<[1], [0], [0], [1], [0, 0, 1, 1], [], []>} : vector<32x32xf32>, vector<32x32xf32>, vector<32x32xf32> -> vector<32x32xf32>
    %47 = math.tanh %46 : vector<32x32xf32>
    %48 = arith.addf %29, %47 : vector<32x32xf32>
    %cst_37 = arith.constant dense<0.000000e+00> : vector<32x32xf32>
    %49 = tpu.matmul %3, %48, %cst_37 {dimension_numbers = #tpu.dot_dimension_numbers<[1], [0], [0], [1], [0, 0, 1, 1], [], []>} : vector<32x32xf32>, vector<32x32xf32>, vector<32x32xf32> -> vector<32x32xf32>
    %50 = arith.subf %48, %49 : vector<32x32xf32>
    %51 = vector.extract_strided_slice %10 {offsets = [0, 32], sizes = [32, 32], strides = [1, 1]} : vector<32x64xf32> to vector<32x32xf32>
    %52 = arith.addf %50, %51 : vector<32x32xf32>
    %cst_38 = arith.constant dense<0.000000e+00> : vector<32x32xf32>
    %53 = tpu.matmul %3, %52, %cst_38 {dimension_numbers = #tpu.dot_dimension_numbers<[1], [0], [0], [1], [0, 0, 1, 1], [], []>} : vector<32x32xf32>, vector<32x32xf32>, vector<32x32xf32> -> vector<32x32xf32>
    %54 = arith.subf %52, %53 : vector<32x32xf32>
    %cst_39 = arith.constant dense<0.000000e+00> : vector<32x64xf32>
    %55 = tpu.matmul %54, %44, %cst_39 {dimension_numbers = #tpu.dot_dimension_numbers<[1], [0], [0], [1], [0, 0, 1, 1], [], []>} : vector<32x32xf32>, vector<32x64xf32>, vector<32x64xf32> -> vector<32x64xf32>
    %cst_40 = arith.constant 0.000000e+00 : f32
    %56 = vector.broadcast %cst_40 : f32 to vector<32x64xf32>
    %57 = arith.maximumf %55, %56 : vector<32x64xf32>
    %cst_41 = arith.constant dense<0.000000e+00> : vector<32x32xf32>
    %58 = tpu.matmul %57, %45, %cst_41 {dimension_numbers = #tpu.dot_dimension_numbers<[1], [0], [0], [1], [0, 0, 1, 1], [], []>} : vector<32x64xf32>, vector<64x32xf32>, vector<32x32xf32> -> vector<32x32xf32>
    %59 = arith.addf %54, %58 : vector<32x32xf32>
    %cst_42 = arith.constant dense<0.000000e+00> : vector<32x32xf32>
    %60 = tpu.matmul %3, %59, %cst_42 {dimension_numbers = #tpu.dot_dimension_numbers<[1], [0], [0], [1], [0, 0, 1, 1], [], []>} : vector<32x32xf32>, vector<32x32xf32>, vector<32x32xf32> -> vector<32x32xf32>
    %61 = arith.subf %59, %60 : vector<32x32xf32>
    %62 = arith.addf %49, %53 : vector<32x32xf32>
    %63 = arith.addf %62, %60 : vector<32x32xf32>
    %c416 = arith.constant 416 : index
    %c0_43 = arith.constant 0 : index
    %64 = vector.load %arg3[%c416, %c0_43] : memref<552x32xf32, #tpu.memory_space<vmem>>, vector<32x32xf32>
    %c448 = arith.constant 448 : index
    %c0_44 = arith.constant 0 : index
    %65 = vector.load %arg3[%c448, %c0_44] : memref<552x32xf32, #tpu.memory_space<vmem>>, vector<32x32xf32>
    %c480 = arith.constant 480 : index
    %c0_45 = arith.constant 0 : index
    %66 = vector.load %arg3[%c480, %c0_45] : memref<552x32xf32, #tpu.memory_space<vmem>>, vector<32x32xf32>
    %cst_46 = arith.constant dense<0.000000e+00> : vector<32x32xf32>
    %67 = tpu.matmul %63, %64, %cst_46 {dimension_numbers = #tpu.dot_dimension_numbers<[1], [0], [0], [1], [0, 0, 1, 1], [], []>} : vector<32x32xf32>, vector<32x32xf32>, vector<32x32xf32> -> vector<32x32xf32>
    %cst_47 = arith.constant dense<0.000000e+00> : vector<32x32xf32>
    %68 = tpu.matmul %4, %67, %cst_47 {dimension_numbers = #tpu.dot_dimension_numbers<[1], [0], [0], [1], [0, 0, 1, 1], [], []>} : vector<32x32xf32>, vector<32x32xf32>, vector<32x32xf32> -> vector<32x32xf32>
    %cst_48 = arith.constant dense<0.000000e+00> : vector<32x32xf32>
    %69 = tpu.matmul %63, %65, %cst_48 {dimension_numbers = #tpu.dot_dimension_numbers<[1], [0], [0], [1], [0, 0, 1, 1], [], []>} : vector<32x32xf32>, vector<32x32xf32>, vector<32x32xf32> -> vector<32x32xf32>
    %70 = arith.addf %68, %69 : vector<32x32xf32>
    %cst_49 = arith.constant dense<0.000000e+00> : vector<32x32xf32>
    %71 = tpu.matmul %63, %66, %cst_49 {dimension_numbers = #tpu.dot_dimension_numbers<[1], [0], [0], [1], [0, 0, 1, 1], [], []>} : vector<32x32xf32>, vector<32x32xf32>, vector<32x32xf32> -> vector<32x32xf32>
    %cst_50 = arith.constant dense<0.000000e+00> : vector<32x32xf32>
    %72 = tpu.matmul %5, %71, %cst_50 {dimension_numbers = #tpu.dot_dimension_numbers<[1], [0], [0], [1], [0, 0, 1, 1], [], []>} : vector<32x32xf32>, vector<32x32xf32>, vector<32x32xf32> -> vector<32x32xf32>
    %73 = arith.addf %70, %72 : vector<32x32xf32>
    %74 = arith.addf %42, %73 : vector<32x32xf32>
    %c544 = arith.constant 544 : index
    %c0_51 = arith.constant 0 : index
    %75 = vector.load %arg3[%c544, %c0_51] : memref<552x32xf32, #tpu.memory_space<vmem>>, vector<1x32xf32>
    %c545 = arith.constant 545 : index
    %c0_52 = arith.constant 0 : index
    %76 = vector.load %arg3[%c545, %c0_52] : memref<552x32xf32, #tpu.memory_space<vmem>>, vector<1x32xf32>
    %c546 = arith.constant 546 : index
    %c0_53 = arith.constant 0 : index
    %77 = vector.load %arg3[%c546, %c0_53] : memref<552x32xf32, #tpu.memory_space<vmem>>, vector<1x32xf32>
    %cst_54 = arith.constant dense<0.000000e+00> : vector<32xf32>
    %78 = vector.multi_reduction <add>, %61, %cst_54 [1] : vector<32x32xf32> to vector<32xf32>
    %79 = vector.shape_cast %78 : vector<32xf32> to vector<32x1xf32>
    %cst_55 = arith.constant 3.200000e+01 : f32
    %80 = vector.broadcast %cst_55 : f32 to vector<32x1xf32>
    %81 = arith.divf %79, %80 : vector<32x1xf32>
    %82 = vector.broadcast %81 : vector<32x1xf32> to vector<32x32xf32>
    %83 = arith.subf %61, %82 : vector<32x32xf32>
    %84 = arith.mulf %83, %83 : vector<32x32xf32>
    %cst_56 = arith.constant dense<0.000000e+00> : vector<32xf32>
    %85 = vector.multi_reduction <add>, %84, %cst_56 [1] : vector<32x32xf32> to vector<32xf32>
    %86 = vector.shape_cast %85 : vector<32xf32> to vector<32x1xf32>
    %cst_57 = arith.constant 3.200000e+01 : f32
    %87 = vector.broadcast %cst_57 : f32 to vector<32x1xf32>
    %88 = arith.divf %86, %87 : vector<32x1xf32>
    %89 = vector.broadcast %81 : vector<32x1xf32> to vector<32x32xf32>
    %90 = arith.subf %61, %89 : vector<32x32xf32>
    %cst_58 = arith.constant 9.99999974E-6 : f32
    %91 = vector.broadcast %cst_58 : f32 to vector<32x1xf32>
    %92 = arith.addf %88, %91 : vector<32x1xf32>
    %93 = math.rsqrt %92 : vector<32x1xf32>
    %94 = vector.broadcast %93 : vector<32x1xf32> to vector<32x32xf32>
    %95 = arith.mulf %90, %94 : vector<32x32xf32>
    %96 = vector.broadcast %75 : vector<1x32xf32> to vector<32x32xf32>
    %97 = arith.mulf %95, %96 : vector<32x32xf32>
    %98 = vector.broadcast %76 : vector<1x32xf32> to vector<32x32xf32>
    %99 = arith.addf %97, %98 : vector<32x32xf32>
    %c288 = arith.constant 288 : index
    %c0_59 = arith.constant 0 : index
    %100 = vector.load %arg3[%c288, %c0_59] : memref<552x32xf32, #tpu.memory_space<vmem>>, vector<32x32xf32>
    %cst_60 = arith.constant dense<0.000000e+00> : vector<32x32xf32>
    %101 = tpu.matmul %100, %99, %cst_60 {dimension_numbers = #tpu.dot_dimension_numbers<[1], [0], [0], [1], [0, 0, 1, 1], [], []>} : vector<32x32xf32>, vector<32x32xf32>, vector<32x32xf32> -> vector<32x32xf32>
    %c512 = arith.constant 512 : index
    %c0_61 = arith.constant 0 : index
    %102 = vector.load %arg3[%c512, %c0_61] : memref<552x32xf32, #tpu.memory_space<vmem>>, vector<32x32xf32>
    %cst_62 = arith.constant dense<0.000000e+00> : vector<32x32xf32>
    %103 = tpu.matmul %101, %102, %cst_62 {dimension_numbers = #tpu.dot_dimension_numbers<[1], [0], [0], [1], [0, 0, 1, 1], [], []>} : vector<32x32xf32>, vector<32x32xf32>, vector<32x32xf32> -> vector<32x32xf32>
    %104 = vector.broadcast %77 : vector<1x32xf32> to vector<32x32xf32>
    %105 = arith.addf %103, %104 : vector<32x32xf32>
    %c0_63 = arith.constant 0 : index
    %c0_64 = arith.constant 0 : index
    %106 = vector.load %arg4[%c0_63, %c0_64] : memref<64x32xf32, #tpu.memory_space<vmem>>, vector<32x32xf32>
    tpu.vector_store %arg4[%c0_63, %c0_64], %105 {strides = array<i32>} : memref<64x32xf32, #tpu.memory_space<vmem>>, vector<32x32xf32>,
    %c32_65 = arith.constant 32 : index
    %c0_66 = arith.constant 0 : index
    %107 = vector.load %arg4[%c32_65, %c0_66] : memref<64x32xf32, #tpu.memory_space<vmem>>, vector<32x32xf32>
    tpu.vector_store %arg4[%c32_65, %c0_66], %74 {strides = array<i32>} : memref<64x32xf32, #tpu.memory_space<vmem>>, vector<32x32xf32>,
    return
  }
  func.func @transform_0(%arg0: i32) -> (i32, i32) {
    %c0_i32 = arith.constant 0 : i32
    %c0_i32_0 = arith.constant 0 : i32
    %c0_i32_1 = arith.constant 0 : i32
    return %c0_i32, %c0_i32_0 : i32, i32
  }
  func.func @transform_1(%arg0: i32) -> (i32, i32) {
    %c0_i32 = arith.constant 0 : i32
    %c0_i32_0 = arith.constant 0 : i32
    %c0_i32_1 = arith.constant 0 : i32
    return %c0_i32, %c0_i32_0 : i32, i32
  }
  func.func @transform_2(%arg0: i32) -> (i32, i32) {
    %c0_i32 = arith.constant 0 : i32
    %c0_i32_0 = arith.constant 0 : i32
    %c0_i32_1 = arith.constant 0 : i32
    return %c0_i32, %c0_i32_0 : i32, i32
  }
  func.func @transform_3(%arg0: i32) -> (i32, i32) {
    %c0_i32 = arith.constant 0 : i32
    %c0_i32_0 = arith.constant 0 : i32
    %c0_i32_1 = arith.constant 0 : i32
    return %c0_i32, %c0_i32_0 : i32, i32
  }
}

</mosaic_0001>

<bundles_post_ra>
// kernel: tpu_custom_call.1
= control target key start
LH: loop header
LB: loop body
LE: loop exit
PB: predicated region body
PF: predicated region fallthrough
CT: control target
= control target key end

     0   :  { %vm46_vm0 = vcmask 261120   ;;  %vm124_vm1 = vcmask 523264   ;;  %s1470_s14 = smov 96   ;;  %s2180_s1 = inlined_call_operand.vmem [shape: f32[128,64], index: 1, kind: input, shape index: {}]   ;;  %s2181_s2 = inlined_call_operand.vmem [shape: f32[552,32], index: 2, kind: input, shape index: {}]   ;;  %s2182_s0 = inlined_call_operand.vmem [shape: f32[128,32], index: 0, kind: input, shape index: {}]   ;;  %s2183_s3 = inlined_call_operand.vmem [shape: f32[64,32], index: 3, kind: output, shape index: {}]  }
   0x1   :  { %v45_v0 = vld [vmem:[%s2180_s1 + $0x18] sm:$0xff]  ;;  %v44_v2 = vld [vmem:[%s2180_s1 + $0x10] sm:$0xff]  ;;  %v43_v4 = vld [vmem:[%s2180_s1 + $0x8] sm:$0xff] }
   0x2   :  { %v169_v1 = vld [vmem:[%s2181_s2 + $0x18] sm:$0xff]  ;;  %83 = vmatpush.msra.mxu0 %v45_v0  ;;  %v168_v3 = vld [vmem:[%s2181_s2 + $0x10] sm:$0xff]  ;;  %v167_v5 = vld [vmem:[%s2181_s2 + $0x8] sm:$0xff] }
   0x3   :  { %206 = vmatpush.msra.mxu2 %v169_v1  ;;  %v42_v6 = vld [vmem:[%s2180_s1] sm:$0xff]  ;;  %v19_v10 = vld [vmem:[%s2182_s0 + $0x28] sm:$0xff]  ;;  %v20_v12 = vld [vmem:[%s2182_s0 + $0x30] sm:$0xff] }
   0x4   :  { %84 = vmatpush.msra.mxu0 %v44_v2  ;;  %v166_v7 = vld [vmem:[%s2181_s2] sm:$0xff]  ;;  %v15_v11 = vld [vmem:[%s2182_s0 + $0x8] sm:$0xff]  ;;  %v16_v13 = vld [vmem:[%s2182_s0 + $0x10] sm:$0xff] }
   0x5   :  { %207 = vmatpush.msra.mxu2 %v168_v3  ;;  %v18_v8 = vld [vmem:[%s2182_s0 + $0x20] sm:$0xff]  ;;  %v21_v14 = vld [vmem:[%s2182_s0 + $0x38] sm:$0xff]  ;;  %v23_v17 = vld [vmem:[%s2182_s0 + $0x48] sm:$0xff] }
   0x6   :  { %85 = vmatpush.msra.mxu0 %v43_v4  ;;  %v14_v9 = vld [vmem:[%s2182_s0] sm:$0xff]  ;;  %v17_v15 = vld [vmem:[%s2182_s0 + $0x18] sm:$0xff]  ;;  %v24_v18 = vld [vmem:[%s2182_s0 + $0x50] sm:$0xff] }
   0x7   :  { %208 = vmatpush.msra.mxu2 %v167_v5  ;;  %v22_v16 = vld [vmem:[%s2182_s0 + $0x40] sm:$0xff]  ;;  %v25_v19 = vld [vmem:[%s2182_s0 + $0x58] sm:$0xff]  ;;  %v1586_v40 = vld [vmem:[%s2181_s2 + $0xc8] sm:$0xff] }
   0x8   :  { %86 = vmatpush.msra.mxu0 %v42_v6  ;;  %v1578_v38 = vld [vmem:[%s2181_s2 + $0xc0] sm:$0xff]  ;;  %v1593_v42 = vld [vmem:[%s2181_s2 + $0xd0] sm:$0xff]  ;;  %v1600_v46 = vld [vmem:[%s2181_s2 + $0xd8] sm:$0xff] }
   0x9   :  { %209 = vmatpush.msra.mxu2 %v166_v7  ;;  %1315 = vmatmul.msk.f32.vlgmr.msra.gmra.mxu0 %vm46_vm0, %v18_v8  ;;  %v120_v51 = vld [vmem:[%s2180_s1 + $0x60] sm:$0xff]  ;;  %v121_v53 = vld [vmem:[%s2180_s1 + $0x68] sm:$0xff]  ;;  %v122_v54 = vld [vmem:[%s2180_s1 + $0x70] sm:$0xff] }
   0xa   :  { %1327 = vmatmul.msk.f32.vlgmr.msra.gmra.mxu2 %vm46_vm0, %v14_v9  ;;  %v123_v55 = vld [vmem:[%s2180_s1 + $0x78] sm:$0xff] }
   0xb   :  { %v173_v8 = vld [vmem:[%s2180_s1 + $0x38] sm:$0xff] }
  0x11   :  { %1316 = vmatmul.msk.f32.gmra.mxu0 %vm46_vm0, %v19_v10  ;;  %v171_v10 = vld [vmem:[%s2180_s1 + $0x28] sm:$0xff] }
  0x12   :  { %1328 = vmatmul.msk.f32.gmra.mxu2 %vm46_vm0, %v15_v11 }
  0x19   :  { %1317 = vmatmul.msk.f32.gmra.mxu0 %vm46_vm0, %v20_v12  ;;  %v181_v12 = vld [vmem:[%s2181_s2 + $0x78] sm:$0xff] }
  0x1a   :  { %1329 = vmatmul.msk.f32.gmra.mxu2 %vm46_vm0, %v16_v13 }
  0x21   :  { %1318 = vmatmul.msk.f32.gmra.mxu0 %vm46_vm0, %v21_v14  ;;  %v179_v14 = vld [vmem:[%s2181_s2 + $0x68] sm:$0xff] }
  0x22   :  { %1330 = vmatmul.msk.f32.gmra.mxu2 %vm46_vm0, %v17_v15 }
  0x29   :  { %1319 = vmatmul.msk.f32.gmra.mxu0 %vm46_vm0, %v22_v16 }
  0x31   :  { %1320 = vmatmul.msk.f32.gmra.mxu0 %vm46_vm0, %v23_v17 }
  0x39   :  { %1321 = vmatmul.msk.f32.gmra.mxu0 %vm46_vm0, %v24_v18  ;;  %v177_v18 = vld [vmem:[%s2181_s2 + $0x58] sm:$0xff] }
  0x41   :  { %1322 = vmatmul.msk.f32.gmra.mxu0 %vm46_vm0, %v25_v19  ;;  %v176_v19 = vld [vmem:[%s2181_s2 + $0x50] sm:$0xff] }
  0x86   :  { %v88_v20 = vpop.f32.mrf.mxu0 }
  0x8d   :  { %v211_v21 = vpop.f32.mrf.mxu2 }
  0x8e   :  { %v91_v22 = vpop.f32.mrf.mxu0 }
  0x95   :  { %v214_v23 = vpop.f32.mrf.mxu2 }
  0x96   :  { %v94_v24 = vpop.f32.mrf.mxu0 }
  0x9d   :  { %v217_v25 = vpop.f32.mrf.mxu2 }
  0x9e   :  { %v97_v26 = vpop.f32.mrf.mxu0  ;;  %1428 = vtanh.f32 %v217_v25 }
  0x9f   :  { %1430 = vtanh.f32 %v214_v23 }
  0xa4   :  { %v1429_v29 = vpop.eup %1428 }
  0xa5   :  { %v220_v27 = vpop.f32.mrf.mxu2  ;;  %v1431_v30 = vpop.eup %1430  ;;  %v1566_v33 = vadd.f32 %v1429_v29, %v16_v13  ;;  %v180_v13 = vld [vmem:[%s2181_s2 + $0x70] sm:$0xff] }
  0xa6   :  { %1432 = vtanh.f32 %v220_v27  ;;  %v100_v28 = vpop.f32.mrf.mxu0  ;;  %v1569_v35 = vadd.f32 %v1431_v30, %v15_v11  ;;  %v170_v11 = vld [vmem:[%s2180_s1 + $0x20] sm:$0xff] }
  0xa7   :  { %1434 = vtanh.f32 %v211_v21  ;;  %v174_v27 = vld [vmem:[%s2181_s2 + $0x40] sm:$0xff] }
  0xac   :  { %v1433_v31 = vpop.eup %1432 }
  0xad   :  { %v1564_v32 = vadd.f32 %v1433_v31, %v17_v15  ;;  %v1435_v36 = vpop.eup %1434  ;;  %v178_v15 = vld [vmem:[%s2181_s2 + $0x60] sm:$0xff] }
  0xae   :  { %v103_v34 = vpop.f32.mrf.mxu0  ;;  %v1573_v37 = vadd.f32 %v1435_v36, %v14_v9  ;;  %v172_v9 = vld [vmem:[%s2180_s1 + $0x30] sm:$0xff] }
  0xaf   :  { %255 = vmatpush.msra.mxu3 %v1564_v32 }
  0xb1   :  { %256 = vmatpush.msra.mxu3 %v1566_v33 }
  0xb3   :  { %257 = vmatpush.msra.mxu3 %v1569_v35 }
  0xb5   :  { %258 = vmatpush.msra.mxu3 %v1573_v37 }
  0xb6   :  { %1331 = vmatmul.msk.f32.vlgmr.msra.gmra.mxu3 %vm46_vm0, %v1578_v38  ;;  %v106_v39 = vpop.f32.mrf.mxu0 }
  0xb7   :  { %337 = vmatpush.msrb.mxu3 %v173_v8 }
  0xb9   :  { %338 = vmatpush.msrb.mxu3 %v172_v9 }
  0xbb   :  { %339 = vmatpush.msrb.mxu3 %v171_v10 }
  0xbd   :  { %340 = vmatpush.msrb.mxu3 %v170_v11 }
  0xbe   :  { %1332 = vmatmul.msk.f32.gmra.mxu3 %vm46_vm0, %v1586_v40  ;;  %v109_v41 = vpop.f32.mrf.mxu0 }
  0xbf   :  { %1436 = vtanh.f32 %v109_v41 }
  0xc0   :  { %1438 = vtanh.f32 %v106_v39 }
  0xc1   :  { %1440 = vtanh.f32 %v103_v34 }
  0xc2   :  { %1442 = vtanh.f32 %v100_v28 }
  0xc3   :  { %1444 = vtanh.f32 %v97_v26  ;;  %v175_v26 = vld [vmem:[%s2181_s2 + $0x48] sm:$0xff] }
  0xc4   :  { %1446 = vtanh.f32 %v94_v24 }
  0xc5   :  { %v1437_v43 = vpop.eup %1436  ;;  %1448 = vtanh.f32 %v91_v22 }
  0xc6   :  { %1333 = vmatmul.msk.f32.gmra.mxu3 %vm46_vm0, %v1593_v42  ;;  %145 = vmatpush.msra.mxu1 %v1437_v43  ;;  %v1439_v44 = vpop.eup %1438  ;;  %1450 = vtanh.f32 %v88_v20 }
  0xc7   :  { %v1441_v45 = vpop.eup %1440 }
  0xc8   :  { %146 = vmatpush.msra.mxu1 %v1439_v44  ;;  %v1443_v47 = vpop.eup %1442  ;;  %v447_v44 = vld [vmem:[%s2181_s2 + $0x158] sm:$0xff] }
  0xc9   :  { %v1445_v48 = vpop.eup %1444 }
  0xca   :  { %147 = vmatpush.msra.mxu1 %v1441_v45  ;;  %v1447_v49 = vpop.eup %1446  ;;  %v451_v45 = vld [vmem:[%s2181_s2 + $0x178] sm:$0xff] }
  0xcb   :  { %v1449_v50 = vpop.eup %1448  ;;  %509 = vmatpush.msra.mxu3 %v451_v45 }
  0xcc   :  { %148 = vmatpush.msra.mxu1 %v1443_v47  ;;  %v1451_v52 = vpop.eup %1450 }
  0xce   :  { %1334 = vmatmul.msk.f32.gmra.mxu3 %vm46_vm0, %v1600_v46  ;;  %149 = vmatpush.msra.mxu1 %v1445_v48  ;;  %v446_v48 = vld [vmem:[%s2181_s2 + $0x150] sm:$0xff] }
  0xd0   :  { %150 = vmatpush.msra.mxu1 %v1447_v49  ;;  %v450_v49 = vld [vmem:[%s2181_s2 + $0x170] sm:$0xff] }
  0xd1   :  { %510 = vmatpush.msra.mxu3 %v450_v49 }
  0xd2   :  { %151 = vmatpush.msra.mxu1 %v1449_v50 }
  0xd4   :  { %152 = vmatpush.msra.mxu1 %v1451_v52  ;;  %v455_v52 = vld [vmem:[%s2181_s2 + $0x198] sm:$0xff] }
  0xd5   :  { %1323 = vmatmul.msk.f32.vlgmr.msra.gmra.mxu1 %vm124_vm1, %v120_v51 }
  0xd6   :  { %378 = vmatpush.msrb.mxu1 %v181_v12 }
  0xd8   :  { %379 = vmatpush.msrb.mxu1 %v180_v13 }
  0xda   :  { %380 = vmatpush.msrb.mxu1 %v179_v14 }
  0xdc   :  { %381 = vmatpush.msrb.mxu1 %v178_v15 }
  0xdd   :  { %1324 = vmatmul.msk.f32.gmra.mxu1 %vm124_vm1, %v121_v53  ;;  %v454_v53 = vld [vmem:[%s2181_s2 + $0x190] sm:$0xff] }
  0xde   :  { %382 = vmatpush.msrb.mxu1 %v177_v18 }
  0xe0   :  { %383 = vmatpush.msrb.mxu1 %v176_v19 }
  0xe2   :  { %384 = vmatpush.msrb.mxu1 %v175_v26 }
  0xe4   :  { %385 = vmatpush.msrb.mxu1 %v174_v27 }
  0xe5   :  { %1325 = vmatmul.msk.f32.gmra.mxu1 %vm124_vm1, %v122_v54  ;;  %v445_v54 = vld [vmem:[%s2181_s2 + $0x148] sm:$0xff] }
  0xed   :  { %1326 = vmatmul.msk.f32.gmra.mxu1 %vm124_vm1, %v123_v55  ;;  %v449_v55 = vld [vmem:[%s2181_s2 + $0x168] sm:$0xff] }
  0xee   :  { %511 = vmatpush.msra.mxu3 %v449_v55 }
 0x139   :  { %v1620_v56 = vpop.f32.mrf.mxu3 }
 0x13a   :  { %v272_v6 = vsub.f32 %v1573_v37, %v1620_v56 }
 0x141   :  { %v1622_v57 = vpop.f32.mrf.mxu3 }
 0x142   :  { %v273_v4 = vsub.f32 %v1569_v35, %v1622_v57 }
 0x149   :  { %v1624_v60 = vpop.f32.mrf.mxu3 }
 0x14a   :  { %v274_v2 = vsub.f32 %v1566_v33, %v1624_v60 }
 0x151   :  { %v1626_v62 = vpop.f32.mrf.mxu3 }
 0x152   :  { %v154_v58 = vpop.f32.mrf.mxu1  ;;  %v275_v63 = vsub.f32 %v1564_v32, %v1626_v62 }
 0x153   :  { %v276_v7 = vadd.f32 %v272_v6, %v154_v58  ;;  %v645_v6 = vld [vmem:[%s2181_s2 + $0x20] sm:$0xff] }
 0x15a   :  { %v157_v59 = vpop.f32.mrf.mxu1 }
 0x15b   :  { %749 = vrot.lane.b32.xlu1 %v157_v59, %s1470_s14  ;;  %v277_v5 = vadd.f32 %v273_v4, %v157_v59  ;;  %v444_v59 = vld [vmem:[%s2181_s2 + $0x140] sm:$0xff] }
 0x162   :  { %v160_v61 = vpop.f32.mrf.mxu1 }
 0x163   :  { %747 = vrot.lane.b32.xlu1 %v154_v58, %s1470_s14  ;;  %v278_v3 = vadd.f32 %v274_v2, %v160_v61  ;;  %v453_v58 = vld [vmem:[%s2181_s2 + $0x188] sm:$0xff] }
 0x164   :  { %v646_v2 = vld [vmem:[%s2181_s2 + $0x28] sm:$0xff] }
 0x16a   :  { %v163_v0 = vpop.f32.mrf.mxu1 }
 0x16b   :  { %753 = vrot.lane.b32.xlu0 %v163_v0, %s1470_s14  ;;  %v279_v1 = vadd.f32 %v275_v63, %v163_v0  ;;  %v452_v63 = vld [vmem:[%s2181_s2 + $0x180] sm:$0xff]  ;;  %v648_v0 = vld [vmem:[%s2181_s2 + $0x38] sm:$0xff] }
 0x16d   :  { %292 = vmatpush.msrb.mxu2 %v279_v1 }
 0x16f   :  { %293 = vmatpush.msrb.mxu2 %v278_v3 }
 0x171   :  { %294 = vmatpush.msrb.mxu2 %v277_v5 }
 0x173   :  { %751 = vrot.lane.b32.xlu0 %v160_v61, %s1470_s14  ;;  %295 = vmatpush.msrb.mxu2 %v276_v7  ;;  %v448_v61 = vld [vmem:[%s2181_s2 + $0x160] sm:$0xff] }
 0x174   :  { %1335 = vmatmul.msk.f32.vlgmr.msrb.gmra.mxu2 %vm46_vm0, %v1578_v38  ;;  %512 = vmatpush.msra.mxu3 %v448_v61 }
 0x175   :  { %480 = vmatpush.msra.mxu2 %v447_v44 }
 0x177   :  { %481 = vmatpush.msra.mxu2 %v446_v48 }
 0x179   :  { %482 = vmatpush.msra.mxu2 %v445_v54 }
 0x17b   :  { %483 = vmatpush.msra.mxu2 %v444_v59 }
 0x17c   :  { %1336 = vmatmul.msk.f32.gmra.mxu2 %vm46_vm0, %v1586_v40 }
 0x184   :  { %1337 = vmatmul.msk.f32.gmra.mxu2 %vm46_vm0, %v1593_v42 }
 0x18c   :  { %1338 = vmatmul.msk.f32.gmra.mxu2 %vm46_vm0, %v1600_v46 }
 0x1f7   :  { %v1668_v16 = vpop.f32.mrf.mxu2 }
 0x1f8   :  { %v309_v17 = vsub.f32 %v276_v7, %v1668_v16 }
 0x1fa   :  { %1339 = vmatmul.msk.f32.vlgmr.msrb.gmra.mxu3 %vm46_vm0, %v309_v17 }
 0x1fb   :  { %685 = vmatpush.msrb.mxu3 %v648_v0 }
 0x1ff   :  { %v1678_v20 = vpop.f32.mrf.mxu2 }
 0x200   :  { %v310_v21 = vsub.f32 %v277_v5, %v1678_v20  ;;  %v437_v7 = vadd.f32 %v1678_v20, %v1622_v57 }
 0x202   :  { %1340 = vmatmul.msk.f32.gmra.mxu3 %vm46_vm0, %v310_v21 }
 0x207   :  { %v1682_v22 = vpop.f32.mrf.mxu2 }
 0x208   :  { %v311_v23 = vsub.f32 %v278_v3, %v1682_v22  ;;  %v436_v3 = vadd.f32 %v1668_v16, %v1620_v56  ;;  %v438_v9 = vadd.f32 %v1682_v22, %v1624_v60 }
 0x20a   :  { %1341 = vmatmul.msk.f32.gmra.mxu3 %vm46_vm0, %v311_v23 }
 0x20f   :  { %v1686_v24 = vpop.f32.mrf.mxu2 }
 0x210   :  { %v312_v25 = vsub.f32 %v279_v1, %v1686_v24  ;;  %v647_v1 = vld [vmem:[%s2181_s2 + $0x30] sm:$0xff]  ;;  %v439_v57 = vadd.f32 %v1686_v24, %v1626_v62 }
 0x211   :  { %686 = vmatpush.msrb.mxu3 %v647_v1 }
 0x212   :  { %1342 = vmatmul.msk.f32.gmra.mxu3 %vm46_vm0, %v312_v25 }
 0x213   :  { %687 = vmatpush.msrb.mxu3 %v646_v2 }
 0x215   :  { %688 = vmatpush.msrb.mxu3 %v645_v6 }
 0x27d   :  { %v342_v28 = vpop.f32.mrf.mxu3 }
 0x27e   :  { %v354_v29 = vmax.f32 %v342_v28, 0.0  ;;  %v1793_v28 = vld [vmem:[%s2181_s2 + $0x100] sm:$0xff] }
 0x280   :  { %1343 = vmatmul.msk.f32.vlgmr.msrb.gmra.mxu1 %vm124_vm1, %v354_v29  ;;  %v1800_v29 = vld [vmem:[%s2181_s2 + $0xe0] sm:$0xff] }
 0x285   :  { %v345_v30 = vpop.f32.mrf.mxu3 }
 0x286   :  { %v355_v31 = vmax.f32 %v345_v30, 0.0 }
 0x288   :  { %1344 = vmatmul.msk.f32.gmra.mxu1 %vm124_vm1, %v355_v31  ;;  %v1807_v31 = vld [vmem:[%s2181_s2 + $0x108] sm:$0xff] }
 0x28d   :  { %v348_v32 = vpop.f32.mrf.mxu3 }
 0x28e   :  { %v356_v33 = vmax.f32 %v348_v32, 0.0  ;;  %v1814_v32 = vld [vmem:[%s2181_s2 + $0xe8] sm:$0xff] }
 0x290   :  { %1345 = vmatmul.msk.f32.gmra.mxu1 %vm124_vm1, %v356_v33 }
 0x295   :  { %v351_v34 = vpop.f32.mrf.mxu3 }
 0x296   :  { %v357_v35 = vmax.f32 %v351_v34, 0.0  ;;  %v1821_v34 = vld [vmem:[%s2181_s2 + $0x110] sm:$0xff] }
 0x298   :  { %1346 = vmatmul.msk.f32.gmra.mxu1 %vm124_vm1, %v357_v35  ;;  %v1828_v35 = vld [vmem:[%s2181_s2 + $0xf0] sm:$0xff] }
 0x2fd   :  { %v387_v36 = vpop.f32.mrf.mxu1 }
 0x2fe   :  { %v399_v51 = vadd.f32 %v387_v36, %v309_v17 }
 0x305   :  { %v390_v37 = vpop.f32.mrf.mxu1 }
 0x306   :  { %v400_v50 = vadd.f32 %v390_v37, %v310_v21  ;;  %v1835_v37 = vld [vmem:[%s2181_s2 + $0x118] sm:$0xff] }
 0x30d   :  { %v393_v39 = vpop.f32.mrf.mxu1 }
 0x30e   :  { %v1708_v47 = vadd.f32 %v393_v39, %v311_v23  ;;  %v1842_v39 = vld [vmem:[%s2181_s2 + $0xf8] sm:$0xff] }
 0x315   :  { %v396_v41 = vpop.f32.mrf.mxu1 }
 0x316   :  { %v1700_v43 = vadd.f32 %v396_v41, %v312_v25 }
 0x318   :  { %415 = vmatpush.msrb.mxu0 %v1700_v43 }
 0x31a   :  { %416 = vmatpush.msrb.mxu0 %v1708_v47 }
 0x31c   :  { %417 = vmatpush.msrb.mxu0 %v400_v50 }
 0x31e   :  { %418 = vmatpush.msrb.mxu0 %v399_v51 }
 0x31f   :  { %1347 = vmatmul.msk.f32.vlgmr.msrb.gmra.mxu0 %vm46_vm0, %v1578_v38 }
 0x320   :  { %579 = vmatpush.msra.mxu0 %v455_v52 }
 0x322   :  { %580 = vmatpush.msra.mxu0 %v454_v53 }
 0x324   :  { %581 = vmatpush.msra.mxu0 %v453_v58 }
 0x326   :  { %582 = vmatpush.msra.mxu0 %v452_v63 }
 0x327   :  { %1348 = vmatmul.msk.f32.gmra.mxu0 %vm46_vm0, %v1586_v40 }
 0x32f   :  { %1349 = vmatmul.msk.f32.gmra.mxu0 %vm46_vm0, %v1593_v42 }
 0x337   :  { %1350 = vmatmul.msk.f32.gmra.mxu0 %vm46_vm0, %v1600_v46 }
 0x39c   :  { %v420_v4 = vpop.f32.mrf.mxu0 }
 0x39d   :  { %v440_v5 = vadd.f32 %v436_v3, %v420_v4  ;;  %v432_v60 = vsub.f32 %v399_v51, %v420_v4 }
 0x39f   :  { %1351 = vmatmul.msk.f32.vlgmr.msra.gmra.mxu2 %vm46_vm0, %v440_v5  ;;  %1355 = vmatmul.msk.f32.vlgmr.msra.gmra.mxu3 %vm46_vm0, %v440_v5 }
 0x3a0   :  { %1363 = vmatmul.msk.f32.vlgmr.msra.gmra.mxu0 %vm46_vm0, %v440_v5 }
 0x3a4   :  { %v423_v8 = vpop.f32.mrf.mxu0 }
 0x3a5   :  { %v441_v56 = vadd.f32 %v437_v7, %v423_v8  ;;  %v433_v14 = vsub.f32 %v400_v50, %v423_v8  ;;  %v754_v8 = vpop.permute.xlu0 %753 }
 0x3a7   :  { %1352 = vmatmul.msk.f32.gmra.mxu2 %vm46_vm0, %v441_v56  ;;  %1356 = vmatmul.msk.f32.gmra.mxu3 %vm46_vm0, %v441_v56 }
 0x3a8   :  { %1364 = vmatmul.msk.f32.gmra.mxu0 %vm46_vm0, %v441_v56  ;;  %v750_v56 = vpop.permute.xlu1 %749 }
 0x3ac   :  { %v426_v10 = vpop.f32.mrf.mxu0 }
 0x3ad   :  { %v442_v11 = vadd.f32 %v438_v9, %v426_v10  ;;  %v434_v15 = vsub.f32 %v1708_v47, %v426_v10 }
 0x3af   :  { %1353 = vmatmul.msk.f32.gmra.mxu2 %vm46_vm0, %v442_v11  ;;  %1357 = vmatmul.msk.f32.gmra.mxu3 %vm46_vm0, %v442_v11 }
 0x3b0   :  { %1365 = vmatmul.msk.f32.gmra.mxu0 %vm46_vm0, %v442_v11 }
 0x3b4   :  { %v429_v12 = vpop.f32.mrf.mxu0 }
 0x3b5   :  { %v443_v13 = vadd.f32 %v439_v57, %v429_v12  ;;  %v435_v62 = vsub.f32 %v1700_v43, %v429_v12 }
 0x3b7   :  { %1354 = vmatmul.msk.f32.gmra.mxu2 %vm46_vm0, %v443_v13  ;;  %1358 = vmatmul.msk.f32.gmra.mxu3 %vm46_vm0, %v443_v13 }
 0x3b8   :  { %1366 = vmatmul.msk.f32.gmra.mxu0 %vm46_vm0, %v443_v13  ;;  %v752_v13 = vpop.permute.xlu0 %751 }
 0x3bf   :  { %1371 = vmatmul.msk.f32.vlgmr.msrb.gmra.mxu3 %vm46_vm0, %v432_v60 }
 0x3c7   :  { %1372 = vmatmul.msk.f32.gmra.mxu3 %vm46_vm0, %v433_v14 }
 0x3cf   :  { %1373 = vmatmul.msk.f32.gmra.mxu3 %vm46_vm0, %v434_v15 }
 0x3d7   :  { %1374 = vmatmul.msk.f32.gmra.mxu3 %vm46_vm0, %v435_v62 }
 0x41d   :  { %v584_v16 = vpop.f32.mrf.mxu0 }
 0x422   :  { %v485_v17 = vpop.f32.mrf.mxu2  ;;  %v514_v18 = vpop.f32.mrf.mxu3 }
 0x425   :  { %v587_v19 = vpop.f32.mrf.mxu0 }
 0x42a   :  { %v488_v20 = vpop.f32.mrf.mxu2  ;;  %v517_v21 = vpop.f32.mrf.mxu3 }
 0x42d   :  { %v590_v22 = vpop.f32.mrf.mxu0 }
 0x432   :  { %v491_v23 = vpop.f32.mrf.mxu2  ;;  %v520_v24 = vpop.f32.mrf.mxu3 }
 0x435   :  { %v593_v25 = vpop.f32.mrf.mxu0 }
 0x436   :  { %620 = vmatpush.msrb.mxu2 %v593_v25 }
 0x438   :  { %621 = vmatpush.msrb.mxu2 %v590_v22  ;;  %v659_v22 = vld [vmem:[%s2181_s2 + $0xb0] sm:$0xff] }
 0x43a   :  { %622 = vmatpush.msrb.mxu2 %v587_v19  ;;  %v494_v26 = vpop.f32.mrf.mxu2  ;;  %v1788_v27 = vpop.f32.mrf.mxu3  ;;  %v650_v19 = vld [vmem:[%s2180_s1 + $0x48] sm:$0xff] }
 0x43b   :  { %550 = vmatpush.msra.mxu1 %v494_v26 }
 0x43c   :  { %623 = vmatpush.msrb.mxu2 %v584_v16 }
 0x43d   :  { %551 = vmatpush.msra.mxu1 %v491_v23  ;;  %1367 = vmatmul.msk.f32.vlgmr.msrb.gmra.mxu2 %vm46_vm0, %v1793_v28  ;;  %v658_v23 = vld [vmem:[%s2181_s2 + $0xa8] sm:$0xff] }
 0x43f   :  { %552 = vmatpush.msra.mxu1 %v488_v20  ;;  %v649_v20 = vld [vmem:[%s2180_s1 + $0x40] sm:$0xff] }
 0x441   :  { %553 = vmatpush.msra.mxu1 %v485_v17  ;;  %v748_v17 = vpop.permute.xlu1 %747 }
 0x442   :  { %1359 = vmatmul.msk.f32.vlgmr.msra.gmra.mxu1 %vm46_vm0, %v1800_v29  ;;  %v690_v30 = vpop.f32.mrf.mxu3 }
 0x445   :  { %1368 = vmatmul.msk.f32.gmra.mxu2 %vm46_vm0, %v1807_v31 }
 0x44a   :  { %1360 = vmatmul.msk.f32.gmra.mxu1 %vm46_vm0, %v1814_v32  ;;  %v693_v33 = vpop.f32.mrf.mxu3 }
 0x44d   :  { %1369 = vmatmul.msk.f32.gmra.mxu2 %vm46_vm0, %v1821_v34 }
 0x452   :  { %1361 = vmatmul.msk.f32.gmra.mxu1 %vm46_vm0, %v1828_v35  ;;  %v696_v36 = vpop.f32.mrf.mxu3 }
 0x453   :  { %1452 = vtanh.f32 %v696_v36 }
 0x455   :  { %1370 = vmatmul.msk.f32.gmra.mxu2 %vm46_vm0, %v1835_v37 }
 0x459   :  { %v1453_v43 = vpop.eup %1452 }
 0x45a   :  { %1362 = vmatmul.msk.f32.gmra.mxu1 %vm46_vm0, %v1842_v39  ;;  %v699_v41 = vpop.f32.mrf.mxu3  ;;  %v708_v48 = vadd.f32 %v1453_v43, %v434_v15 }
 0x45b   :  { %1454 = vtanh.f32 %v699_v41 }
 0x45c   :  { %1456 = vtanh.f32 %v693_v33  ;;  %v655_v33 = vld [vmem:[%s2181_s2 + $0x90] sm:$0xff] }
 0x45d   :  { %1458 = vtanh.f32 %v690_v30  ;;  %v656_v30 = vld [vmem:[%s2181_s2 + $0x98] sm:$0xff] }
 0x461   :  { %v1455_v44 = vpop.eup %1454 }
 0x462   :  { %v709_v45 = vadd.f32 %v1455_v44, %v435_v62  ;;  %v1457_v47 = vpop.eup %1456 }
 0x463   :  { %v1459_v49 = vpop.eup %1458  ;;  %v707_v50 = vadd.f32 %v1457_v47, %v433_v14  ;;  %v651_v14 = vld [vmem:[%s2180_s1 + $0x50] sm:$0xff] }
 0x464   :  { %722 = vmatpush.msrb.mxu1 %v709_v45  ;;  %v706_v51 = vadd.f32 %v1459_v49, %v432_v60  ;;  %v652_v60 = vld [vmem:[%s2180_s1 + $0x58] sm:$0xff]  ;;  %v653_v49 = vld [vmem:[%s2181_s2 + $0x80] sm:$0xff] }
 0x465   :  { %820 = vmatpush.msra.mxu2 %v652_v60  ;;  %v933_v60 = vld [vmem:[%s2181_s2 + $0x1d0] sm:$0xff] }
 0x466   :  { %723 = vmatpush.msrb.mxu1 %v708_v48 }
 0x467   :  { %821 = vmatpush.msra.mxu2 %v651_v14 }
 0x468   :  { %724 = vmatpush.msrb.mxu1 %v707_v50 }
 0x469   :  { %822 = vmatpush.msra.mxu2 %v650_v19 }
 0x46a   :  { %725 = vmatpush.msrb.mxu1 %v706_v51 }
 0x46b   :  { %1375 = vmatmul.msk.f32.vlgmr.msrb.gmra.mxu1 %vm46_vm0, %v1578_v38  ;;  %823 = vmatpush.msra.mxu2 %v649_v20 }
 0x473   :  { %1376 = vmatmul.msk.f32.gmra.mxu1 %vm46_vm0, %v1586_v40 }
 0x47b   :  { %1377 = vmatmul.msk.f32.gmra.mxu1 %vm46_vm0, %v1593_v42 }
 0x483   :  { %1378 = vmatmul.msk.f32.gmra.mxu1 %vm46_vm0, %v1600_v46 }
 0x4bf   :  { %v555_v52 = vpop.f32.mrf.mxu1 }
 0x4c0   :  { %v556_v53 = vadd.f32 %v555_v52, %v514_v18  ;;  %v625_v54 = vpop.f32.mrf.mxu2 }
 0x4c2   :  { %v1854_v55 = vadd.f32 %v625_v54, %v556_v53 }
 0x4c7   :  { %v558_v58 = vpop.f32.mrf.mxu1 }
 0x4c8   :  { %v559_v59 = vadd.f32 %v558_v58, %v517_v21  ;;  %v628_v61 = vpop.f32.mrf.mxu2  ;;  %v660_v21 = vld [vmem:[%s2181_s2 + $0xb8] sm:$0xff] }
 0x4c9   :  { %861 = vmatpush.msra.mxu3 %v660_v21 }
 0x4ca   :  { %v1856_v63 = vadd.f32 %v628_v61, %v559_v59 }
 0x4cb   :  { %862 = vmatpush.msra.mxu3 %v659_v22 }
 0x4cd   :  { %863 = vmatpush.msra.mxu3 %v658_v23 }
 0x4cf   :  { %v561_v0 = vpop.f32.mrf.mxu1 }
 0x4d0   :  { %v562_v1 = vadd.f32 %v561_v0, %v520_v24  ;;  %v631_v2 = vpop.f32.mrf.mxu2  ;;  %v657_v24 = vld [vmem:[%s2181_s2 + $0xa0] sm:$0xff] }
 0x4d1   :  { %864 = vmatpush.msra.mxu3 %v657_v24 }
 0x4d2   :  { %v1858_v3 = vadd.f32 %v631_v2, %v562_v1 }
 0x4d3   :  { %865 = vmatpush.msra.mxu3 %v656_v30 }
 0x4d5   :  { %866 = vmatpush.msra.mxu3 %v655_v33 }
 0x4d7   :  { %v1860_v4 = vpop.f32.mrf.mxu1 }
 0x4e8   :  { %v1862_v5 = vpop.f32.mrf.mxu1 }
 0x4e9   :  { %v739_v15 = vsub.f32 %v706_v51, %v1862_v5 }
 0x4eb   :  { %v759_v18 = vadd.f32 %v748_v17, %v739_v15  ;;  %v928_v17 = vld [vmem:[%s2181_s2 + $0x1a8] sm:$0xff] }
 0x4f0   :  { %v1864_v6 = vpop.f32.mrf.mxu1 }
 0x4f1   :  { %v740_v57 = vsub.f32 %v707_v50, %v1864_v6  ;;  %v1934_v50 = vpop.f32.mrf.mxu2 }
 0x4f3   :  { %v760_v16 = vadd.f32 %v750_v56, %v740_v57  ;;  %v934_v57 = vld [vmem:[%s2181_s2 + $0x1d8] sm:$0xff] }
 0x4f4   :  { %992 = vmatpush.msrb.mxu2 %v934_v57 }
 0x4f6   :  { %993 = vmatpush.msrb.mxu2 %v933_v60 }
 0x4f8   :  { %v1866_v7 = vpop.f32.mrf.mxu1 }
 0x4f9   :  { %v741_v10 = vsub.f32 %v708_v48, %v1866_v7  ;;  %v654_v48 = vld [vmem:[%s2181_s2 + $0x88] sm:$0xff] }
 0x4fa   :  { %867 = vmatpush.msra.mxu3 %v654_v48 }
 0x4fb   :  { %v761_v62 = vadd.f32 %v752_v13, %v741_v10  ;;  %v929_v13 = vld [vmem:[%s2181_s2 + $0x1b0] sm:$0xff] }
 0x4fc   :  { %868 = vmatpush.msra.mxu3 %v653_v49 }
 0x500   :  { %v1868_v9 = vpop.f32.mrf.mxu1 }
 0x501   :  { %v742_v11 = vsub.f32 %v709_v45, %v1868_v9 }
 0x503   :  { %v762_v12 = vadd.f32 %v754_v8, %v742_v11  ;;  %v930_v11 = vld [vmem:[%s2181_s2 + $0x1b8] sm:$0xff] }
 0x505   :  { %775 = vmatpush.msrb.mxu0 %v762_v12 }
 0x507   :  { %776 = vmatpush.msrb.mxu0 %v761_v62 }
 0x509   :  { %777 = vmatpush.msrb.mxu0 %v760_v16 }
 0x50b   :  { %778 = vmatpush.msrb.mxu0 %v759_v18 }
 0x50c   :  { %1379 = vmatmul.msk.f32.vlgmr.msrb.gmra.mxu0 %vm46_vm0, %v1578_v38 }
 0x50d   :  { %963 = vmatpush.msra.mxu0 %v930_v11 }
 0x50f   :  { %964 = vmatpush.msra.mxu0 %v929_v13 }
 0x511   :  { %965 = vmatpush.msra.mxu0 %v928_v17 }
 0x514   :  { %1380 = vmatmul.msk.f32.gmra.mxu0 %vm46_vm0, %v1586_v40 }
 0x51c   :  { %1381 = vmatmul.msk.f32.gmra.mxu0 %vm46_vm0, %v1593_v42 }
 0x524   :  { %1382 = vmatmul.msk.f32.gmra.mxu0 %vm46_vm0, %v1600_v46 }
 0x589   :  { %v1906_v25 = vpop.f32.mrf.mxu0 }
 0x58a   :  { %v792_v26 = vsub.f32 %v759_v18, %v1906_v25  ;;  %v936_v18 = vld [vmem:[%s2181_s2 + $0x1e8] sm:$0xff]  ;;  %v919_v19 = vadd.f32 %v1906_v25, %v1862_v5 }
 0x58c   :  { %1383 = vmatmul.msk.f32.vlgmr.msra.gmra.mxu2 %vm46_vm0, %v792_v26 }
 0x591   :  { %v1916_v36 = vpop.f32.mrf.mxu0 }
 0x592   :  { %v793_v41 = vsub.f32 %v760_v16, %v1916_v36  ;;  %v937_v16 = vld [vmem:[%s2181_s2 + $0x1f0] sm:$0xff]  ;;  %v920_v24 = vadd.f32 %v1916_v36, %v1864_v6 }
 0x594   :  { %1384 = vmatmul.msk.f32.gmra.mxu2 %vm46_vm0, %v793_v41 }
 0x599   :  { %v1920_v43 = vpop.f32.mrf.mxu0 }
 0x59a   :  { %v794_v44 = vsub.f32 %v761_v62, %v1920_v43  ;;  %v938_v62 = vld [vmem:[%s2181_s2 + $0x1f8] sm:$0xff]  ;;  %v921_v33 = vadd.f32 %v1920_v43, %v1866_v7 }
 0x59c   :  { %1385 = vmatmul.msk.f32.gmra.mxu2 %vm46_vm0, %v794_v44 }
 0x5a1   :  { %v1924_v45 = vpop.f32.mrf.mxu0 }
 0x5a2   :  { %v795_v47 = vsub.f32 %v762_v12, %v1924_v45  ;;  %v922_v6 = vadd.f32 %v1924_v45, %v1868_v9 }
 0x5a4   :  { %1386 = vmatmul.msk.f32.gmra.mxu2 %vm46_vm0, %v795_v47 }
 0x60f   :  { %v825_v51 = vpop.f32.mrf.mxu2 }
 0x610   :  { %v837_v52 = vmax.f32 %v825_v51, 0.0  ;;  %v1471_v51 = vmov 32.0  }
 0x611   :  { %1460 = vrcp.f32 %v1471_v51 }
 0x612   :  { %1387 = vmatmul.msk.f32.vlgmr.msra.gmra.mxu3 %vm124_vm1, %v837_v52 }
 0x617   :  { %v828_v53 = vpop.f32.mrf.mxu2  ;;  %v1461_v9 = vpop.eup %1460 }
 0x618   :  { %v838_v54 = vmax.f32 %v828_v53, 0.0  ;;  %v1120_v45 = vmul.f32 32.0, %v1461_v9  ;;  %vm1124_vm2 = vweird.f32 %v1461_v9 }
 0x61a   :  { %1388 = vmatmul.msk.f32.gmra.mxu3 %vm124_vm1, %v838_v54  ;;  %v1121_v52 = vsub.f32 1.0, %v1120_v45 }
 0x61c   :  { %v1122_v53 = vmul.f32 %v1461_v9, %v1121_v52 }
 0x61e   :  { %v1123_v54 = vadd.f32 %v1461_v9, %v1122_v53 }
 0x61f   :  { %v831_v58 = vpop.f32.mrf.mxu2 }
 0x620   :  { %v839_v59 = vmax.f32 %v831_v58, 0.0  ;;  %v2019_v58 = vsel %vm1124_vm2, %v1461_v9, %v1123_v54 }
 0x622   :  { %1389 = vmatmul.msk.f32.gmra.mxu3 %vm124_vm1, %v839_v59 }
 0x627   :  { %v834_v61 = vpop.f32.mrf.mxu2 }
 0x628   :  { %v840_v0 = vmax.f32 %v834_v61, 0.0 }
 0x62a   :  { %1390 = vmatmul.msk.f32.gmra.mxu3 %vm124_vm1, %v840_v0 }
 0x695   :  { %v870_v1 = vpop.f32.mrf.mxu3 }
 0x696   :  { %v882_v15 = vadd.f32 %v870_v1, %v792_v26 }
 0x69d   :  { %v873_v2 = vpop.f32.mrf.mxu3 }
 0x69e   :  { %v883_v14 = vadd.f32 %v873_v2, %v793_v41 }
 0x6a5   :  { %v876_v8 = vpop.f32.mrf.mxu3 }
 0x6a6   :  { %v1948_v12 = vadd.f32 %v876_v8, %v794_v44 }
 0x6ad   :  { %v879_v56 = vpop.f32.mrf.mxu3 }
 0x6ae   :  { %v1940_v10 = vadd.f32 %v879_v56, %v795_v47 }
 0x6b0   :  { %898 = vmatpush.msra.mxu1 %v1940_v10 }
 0x6b2   :  { %899 = vmatpush.msra.mxu1 %v1948_v12 }
 0x6b4   :  { %900 = vmatpush.msra.mxu1 %v883_v14 }
 0x6b6   :  { %901 = vmatpush.msra.mxu1 %v882_v15 }
 0x6b7   :  { %1391 = vmatmul.msk.f32.vlgmr.msra.gmra.mxu1 %vm46_vm0, %v1578_v38  ;;  %v932_v38 = vld [vmem:[%s2181_s2 + $0x1c8] sm:$0xff] }
 0x6b8   :  { %1050 = vmatpush.msrb.mxu1 %v938_v62  ;;  %994 = vmatpush.msrb.mxu2 %v932_v38 }
 0x6ba   :  { %1051 = vmatpush.msrb.mxu1 %v937_v16 }
 0x6bc   :  { %1052 = vmatpush.msrb.mxu1 %v936_v18 }
 0x6bf   :  { %1392 = vmatmul.msk.f32.gmra.mxu1 %vm46_vm0, %v1586_v40  ;;  %v927_v40 = vld [vmem:[%s2181_s2 + $0x1a0] sm:$0xff] }
 0x6c0   :  { %966 = vmatpush.msra.mxu0 %v927_v40 }
 0x6c7   :  { %1393 = vmatmul.msk.f32.gmra.mxu1 %vm46_vm0, %v1593_v42  ;;  %v931_v42 = vld [vmem:[%s2181_s2 + $0x1c0] sm:$0xff] }
 0x6c8   :  { %995 = vmatpush.msrb.mxu2 %v931_v42 }
 0x6cf   :  { %1394 = vmatmul.msk.f32.gmra.mxu1 %vm46_vm0, %v1600_v46  ;;  %v935_v46 = vld [vmem:[%s2181_s2 + $0x1e0] sm:$0xff] }
 0x6d0   :  { %1053 = vmatpush.msrb.mxu1 %v935_v46 }
 0x734   :  { %v903_v20 = vpop.f32.mrf.mxu1 }
 0x735   :  { %v1992_v21 = vsub.f32 %v882_v15, %v903_v20  ;;  %v923_v22 = vadd.f32 %v919_v19, %v903_v20 }
 0x737   :  { %1395 = vmatmul.msk.f32.vlgmr.msra.gmra.mxu0 %vm46_vm0, %v923_v22  ;;  %1399 = vmatmul.msk.f32.vlgmr.msrb.gmra.mxu2 %vm46_vm0, %v923_v22  ;;  %v1107_v23 = vsel %vm46_vm0, %v1992_v21, 0.0 }
 0x738   :  { %1407 = vmatmul.msk.f32.vlgmr.msrb.gmra.mxu1 %vm46_vm0, %v923_v22  ;;  %1108 = vadd.xlane.f32.xlu1 %v1107_v23 }
 0x73c   :  { %v906_v26 = vpop.f32.mrf.mxu1 }
 0x73d   :  { %v916_v30 = vsub.f32 %v883_v14, %v906_v26  ;;  %v924_v5 = vadd.f32 %v920_v24, %v906_v26 }
 0x73f   :  { %1396 = vmatmul.msk.f32.gmra.mxu0 %vm46_vm0, %v924_v5  ;;  %1400 = vmatmul.msk.f32.gmra.mxu2 %vm46_vm0, %v924_v5  ;;  %v1110_v25 = vsel %vm46_vm0, %v916_v30, 0.0 }
 0x740   :  { %1408 = vmatmul.msk.f32.gmra.mxu1 %vm46_vm0, %v924_v5  ;;  %1111 = vadd.xlane.f32.xlu0 %v1110_v25 }
 0x744   :  { %v909_v41 = vpop.f32.mrf.mxu1 }
 0x745   :  { %v925_v44 = vadd.f32 %v921_v33, %v909_v41  ;;  %v917_v43 = vsub.f32 %v1948_v12, %v909_v41 }
 0x747   :  { %1397 = vmatmul.msk.f32.gmra.mxu0 %vm46_vm0, %v925_v44  ;;  %1401 = vmatmul.msk.f32.gmra.mxu2 %vm46_vm0, %v925_v44  ;;  %v1113_v49 = vsel %vm46_vm0, %v917_v43, 0.0 }
 0x748   :  { %1409 = vmatmul.msk.f32.gmra.mxu1 %vm46_vm0, %v925_v44 }
 0x74c   :  { %v912_v36 = vpop.f32.mrf.mxu1 }
 0x74d   :  { %v926_v47 = vadd.f32 %v922_v6, %v912_v36  ;;  %v918_v48 = vsub.f32 %v1940_v10, %v912_v36 }
 0x74f   :  { %1398 = vmatmul.msk.f32.gmra.mxu0 %vm46_vm0, %v926_v47  ;;  %1402 = vmatmul.msk.f32.gmra.mxu2 %vm46_vm0, %v926_v47  ;;  %v1116_v7 = vsel %vm46_vm0, %v918_v48, 0.0 }
 0x750   :  { %1410 = vmatmul.msk.f32.gmra.mxu1 %vm46_vm0, %v926_v47  ;;  %1117 = vadd.xlane.f32.xlu2 %v1116_v7  ;;  %v26_v7 = vld [vmem:[%s2182_s0 + $0x60] sm:$0xff] }
 0x751   :  { %v641_v54 = vadd.f32 %v1854_v55, %v26_v7 }
 0x758   :  { %1114 = vadd.xlane.f32.xlu2 %v1113_v49 }
 0x7ab   :  { %v1109_v42 = vpop.xlane.xlu1 %1108 }
 0x7ac   :  { %v1126_v46 = vmul.f32 %v2019_v58, %v1109_v42 }
 0x7ae   :  { %v2044_v20 = vsub.f32 %v1992_v21, %v1126_v46 }
 0x7b3   :  { %v1112_v59 = vpop.xlane.xlu0 %1111 }
 0x7b4   :  { %v1127_v61 = vmul.f32 %v2019_v58, %v1112_v59  ;;  %v968_v0 = vpop.f32.mrf.mxu0 }
 0x7b5   :  { %v1055_v1 = vpop.f32.mrf.mxu1 }
 0x7b6   :  { %v2022_v2 = vsub.f32 %v916_v30, %v1127_v61 }
 0x7b8   :  { %v1135_v8 = vmul.f32 %v2022_v2, %v2022_v2 }
 0x7ba   :  { %v1141_v56 = vsel %vm46_vm0, %v1135_v8, 0.0  ;;  %v997_v5 = vpop.f32.mrf.mxu2 }
 0x7bb   :  { %1142 = vadd.xlane.f32.xlu2 %v1141_v56 }
 0x7bc   :  { %v971_v10 = vpop.f32.mrf.mxu0 }
 0x7bd   :  { %v1058_v11 = vpop.f32.mrf.mxu1 }
 0x7c2   :  { %v1000_v59 = vpop.f32.mrf.mxu2 }
 0x7c3   :  { %v1118_v57 = vpop.xlane.xlu2 %1117 }
 0x7c4   :  { %v974_v12 = vpop.f32.mrf.mxu0  ;;  %v1129_v16 = vmul.f32 %v2019_v58, %v1118_v57 }
 0x7c5   :  { %v1061_v13 = vpop.f32.mrf.mxu1 }
 0x7c6   :  { %v2033_v18 = vsub.f32 %v918_v48, %v1129_v16 }
 0x7c8   :  { %v1137_v19 = vmul.f32 %v2033_v18, %v2033_v18 }
 0x7ca   :  { %v1147_v22 = vsel %vm46_vm0, %v1137_v19, 0.0 }
 0x7cb   :  { %v1115_v60 = vpop.xlane.xlu2 %1114 }
 0x7cc   :  { %v1128_v14 = vmul.f32 %v2019_v58, %v1115_v60  ;;  %v977_v15 = vpop.f32.mrf.mxu0 }
 0x7cd   :  { %v1064_v62 = vpop.f32.mrf.mxu1  ;;  %1021 = vmatpush.msrb.mxu3 %v977_v15 }
 0x7ce   :  { %v2029_v17 = vsub.f32 %v917_v43, %v1128_v14  ;;  %1079 = vmatpush.msrb.mxu0 %v1064_v62 }
 0x7cf   :  { %1022 = vmatpush.msrb.mxu3 %v974_v12 }
 0x7d0   :  { %1080 = vmatpush.msrb.mxu0 %v1061_v13  ;;  %v1136_v38 = vmul.f32 %v2029_v17, %v2029_v17 }
 0x7d1   :  { %1023 = vmatpush.msrb.mxu3 %v971_v10 }
 0x7d2   :  { %1081 = vmatpush.msrb.mxu0 %v1058_v11  ;;  %v1144_v40 = vsel %vm46_vm0, %v1136_v38, 0.0 }
 0x7d3   :  { %1024 = vmatpush.msrb.mxu3 %v968_v0  ;;  %1145 = vadd.xlane.f32.xlu2 %v1144_v40 }
 0x7d4   :  { %1082 = vmatpush.msrb.mxu0 %v1055_v1  ;;  %1403 = vmatmul.msk.f32.vlgmr.msrb.gmra.mxu3 %vm46_vm0, %v1800_v29 }
 0x7d5   :  { %1411 = vmatmul.msk.f32.vlgmr.msrb.gmra.mxu0 %vm46_vm0, %v1793_v28  ;;  %v1134_v28 = vmul.f32 %v2044_v20, %v2044_v20 }
 0x7d7   :  { %v1138_v29 = vsel %vm46_vm0, %v1134_v28, 0.0 }
 0x7db   :  { %1148 = vadd.xlane.f32.xlu2 %v1147_v22  ;;  %v1003_v22 = vpop.f32.mrf.mxu2 }
 0x7dc   :  { %1404 = vmatmul.msk.f32.gmra.mxu3 %vm46_vm0, %v1814_v32 }
 0x7dd   :  { %1412 = vmatmul.msk.f32.gmra.mxu0 %vm46_vm0, %v1807_v31 }
 0x7e3   :  { %1139 = vadd.xlane.f32.xlu2 %v1138_v29  ;;  %v1006_v7 = vpop.f32.mrf.mxu2 }
 0x7e4   :  { %1405 = vmatmul.msk.f32.gmra.mxu3 %vm46_vm0, %v1828_v35 }
 0x7e5   :  { %1413 = vmatmul.msk.f32.gmra.mxu0 %vm46_vm0, %v1821_v34 }
 0x7ec   :  { %1406 = vmatmul.msk.f32.gmra.mxu3 %vm46_vm0, %v1842_v39 }
 0x7ed   :  { %1414 = vmatmul.msk.f32.gmra.mxu0 %vm46_vm0, %v1835_v37 }
 0x82e   :  { %v1143_v32 = vpop.xlane.xlu2 %1142 }
 0x82f   :  { %v1151_v31 = vmul.f32 %v1143_v32, %v2019_v58 }
 0x831   :  { %v1155_v21 = vadd.f32 1e-05, %v1151_v31 }
 0x833   :  { %1462 = vrsqrt.f32 %v1155_v21  ;;  %vm1174_vm6 = vweird.f32 %v1155_v21 }
 0x839   :  { %v2064_v30 = vpop.eup %1462 }
 0x83a   :  { %v1169_v34 = vmul.f32 %v2064_v30, %v1155_v21  ;;  %vm1175_vm4 = vweird.f32 %v2064_v30 }
 0x83b   :  { %vm2087_vm8 = vmor %vm1174_vm6, %vm1175_vm4 }
 0x83c   :  { %v1170_v37 = vmul.f32 %v2064_v30, %v1169_v34 }
 0x83e   :  { %v1171_v36 = vmul.f32 0.5, %v1170_v37  ;;  %v565_v37 = vadd.f32 %v1860_v4, %v1788_v27 }
 0x840   :  { %v1172_v52 = vsub.f32 1.5, %v1171_v36  ;;  %v640_v4 = vadd.f32 %v1934_v50, %v565_v37 }
 0x842   :  { %v1173_v11 = vmul.f32 %v2064_v30, %v1172_v52 }
 0x844   :  { %v1177_v38 = vsel %vm2087_vm8, %v2064_v30, %v1173_v11 }
 0x846   :  { %v1146_v23 = vpop.xlane.xlu2 %1145 }
 0x847   :  { %v1152_v24 = vmul.f32 %v1146_v23, %v2019_v58  ;;  %v1199_v23 = vmul.f32 %v1177_v38, %v2022_v2 }
 0x849   :  { %v1156_v26 = vadd.f32 1e-05, %v1152_v24  ;;  %v28_v24 = vld [vmem:[%s2182_s0 + $0x70] sm:$0xff] }
 0x84b   :  { %1464 = vrsqrt.f32 %v1156_v26  ;;  %vm1184_vm5 = vweird.f32 %v1156_v26 }
 0x84e   :  { %v1149_v35 = vpop.xlane.xlu2 %1148 }
 0x84f   :  { %v1153_v39 = vmul.f32 %v1149_v35, %v2019_v58 }
 0x851   :  { %v1465_v25 = vpop.eup %1464  ;;  %v1157_v33 = vadd.f32 1e-05, %v1153_v39  ;;  %v643_v39 = vadd.f32 %v1858_v3, %v28_v24  ;;  %v1259_v3 = vld [vmem:[%s2181_s2 + $0x210] sm:$0xff] }
 0x852   :  { %v1179_v41 = vmul.f32 %v1465_v25, %v1156_v26  ;;  %v1084_v44 = vpop.f32.mrf.mxu0  ;;  %vm1185_vm3 = vweird.f32 %v1465_v25 }
 0x853   :  { %1466 = vrsqrt.f32 %v1157_v33  ;;  %vm2083_vm7 = vmor %vm1184_vm5, %vm1185_vm3  ;;  %vm1194_vm10 = vweird.f32 %v1157_v33 }
 0x854   :  { %v1180_v6 = vmul.f32 %v1465_v25, %v1179_v41 }
 0x856   :  { %v1181_v47 = vmul.f32 0.5, %v1180_v6  ;;  %v1140_v48 = vpop.xlane.xlu2 %1139 }
 0x857   :  { %v1150_v43 = vmul.f32 %v1140_v48, %v2019_v58  ;;  %v1026_v49 = vpop.f32.mrf.mxu3  ;;  %v27_v58 = vld [vmem:[%s2182_s0 + $0x68] sm:$0xff] }
 0x858   :  { %v1182_v51 = vsub.f32 1.5, %v1181_v47  ;;  %v1027_v9 = vadd.f32 %v1026_v49, %v997_v5  ;;  %v642_v16 = vadd.f32 %v1856_v63, %v27_v58  ;;  %v1425_v63 = vld [vmem:[%s2181_s2 + $0x220] ss:$0 sm:$0xff]  ;;  %v1260_v47 = vld [vmem:[%s2181_s2 + $0x218] sm:$0xff] }
 0x859   :  { %v1467_v45 = vpop.eup %1466  ;;  %v1154_v53 = vadd.f32 1e-05, %v1150_v43  ;;  %1286 = vmatpush.msra.mxu3 %v1260_v47  ;;  %v1258_v43 = vld [vmem:[%s2181_s2 + $0x208] sm:$0xff]  ;;  %v29_v49 = vld [vmem:[%s2182_s0 + $0x78] sm:$0xff] }
 0x85a   :  { %v1189_v61 = vmul.f32 %v1467_v45, %v1157_v33  ;;  %v1096_v0 = vadd.f32 %v1084_v44, %v1027_v9  ;;  %v1087_v1 = vpop.f32.mrf.mxu0  ;;  %v1183_v8 = vmul.f32 %v1465_v25, %v1182_v51  ;;  %vm1195_vm9 = vweird.f32 %v1467_v45 }
 0x85b   :  { %1468 = vrsqrt.f32 %v1154_v53  ;;  %vm1196_vm11 = vmor %vm1194_vm10, %vm1195_vm9  ;;  %vm1164_vm13 = vweird.f32 %v1154_v53  ;;  %1287 = vmatpush.msra.mxu3 %v1259_v3 }
 0x85c   :  { %v1190_v56 = vmul.f32 %v1467_v45, %v1189_v61  ;;  %v1100_v10 = vadd.f32 %v1096_v0, %v641_v54  ;;  %v1187_v60 = vsel %vm2083_vm7, %v1465_v25, %v1183_v8  ;;  %v1204_v25 = vmul.f32 %v1425_v63, %v1199_v23  ;;  %v1213_v0 = vld [vmem:[%s2181_s2 + $0x128] sm:$0xff]  ;;  %v1215_v8 = vld [vmem:[%s2181_s2 + $0x138] sm:$0xff] }
 0x85d   :  { %v1200_v19 = vmul.f32 %v1187_v60, %v2029_v17  ;;  %1288 = vmatpush.msra.mxu3 %v1258_v43  ;;  %v644_v54 = vadd.f32 %v640_v4, %v29_v49 }
 0x85e   :  { %v1191_v57 = vmul.f32 0.5, %v1190_v56  ;;  %1307 = vst.msk [vmem:[%s2183_s3 + $0x20] sm:$0xff] %vm46_vm0, %v1100_v10 }
 0x85f   :  { %v1029_v12 = vpop.f32.mrf.mxu3  ;;  %v1205_v34 = vmul.f32 %v1425_v63, %v1200_v19 }
 0x860   :  { %v1192_v14 = vsub.f32 1.5, %v1191_v57  ;;  %v1030_v15 = vadd.f32 %v1029_v12, %v1000_v59  ;;  %v1427_v57 = vld [vmem:[%s2181_s2 + $0x222] ss:$0 sm:$0xff] }
 0x861   :  { %v1469_v62 = vpop.eup %1468 }
 0x862   :  { %v1193_v40 = vmul.f32 %v1467_v45, %v1192_v14  ;;  %v1159_v42 = vmul.f32 %v1469_v62, %v1154_v53  ;;  %v1097_v46 = vadd.f32 %v1087_v1, %v1030_v15  ;;  %v1090_v21 = vpop.f32.mrf.mxu0  ;;  %vm1165_vm12 = vweird.f32 %v1469_v62  ;;  %v1212_v53 = vld [vmem:[%s2181_s2 + $0x120] sm:$0xff]  ;;  %v1214_v1 = vld [vmem:[%s2181_s2 + $0x130] sm:$0xff] }
 0x863   :  { %vm1166_vm14 = vmor %vm1164_vm13, %vm1165_vm12 }
 0x864   :  { %v1197_v28 = vsel %vm1196_vm11, %v1467_v45, %v1193_v40  ;;  %v1160_v29 = vmul.f32 %v1469_v62, %v1159_v42  ;;  %v1101_v32 = vadd.f32 %v1097_v46, %v642_v16  ;;  %v1257_v45 = vld [vmem:[%s2181_s2 + $0x200] sm:$0xff] }
 0x865   :  { %v1201_v31 = vmul.f32 %v1197_v28, %v2033_v18  ;;  %v1426_v18 = vld [vmem:[%s2181_s2 + $0x221] ss:$0 sm:$0xff]  ;;  %1289 = vmatpush.msra.mxu3 %v1257_v45 }
 0x866   :  { %v1161_v26 = vmul.f32 0.5, %v1160_v29  ;;  %1308 = vst.msk [vmem:[%s2183_s3 + $0x28] sm:$0xff] %vm46_vm0, %v1101_v32  ;;  %v1210_v44 = vadd.f32 %v1426_v18, %v1205_v34  ;;  %v1209_v48 = vadd.f32 %v1426_v18, %v1204_v25 }
 0x867   :  { %v1032_v17 = vpop.f32.mrf.mxu3  ;;  %v1206_v30 = vmul.f32 %v1425_v63, %v1201_v31 }
 0x868   :  { %v1162_v35 = vsub.f32 1.5, %v1161_v26  ;;  %v1033_v2 = vadd.f32 %v1032_v17, %v1003_v22 }
 0x869   :  { %v1211_v5 = vadd.f32 %v1426_v18, %v1206_v30 }
 0x86a   :  { %v1163_v33 = vmul.f32 %v1469_v62, %v1162_v35  ;;  %v1098_v41 = vadd.f32 %v1090_v21, %v1033_v2 }
 0x86b   :  { %1240 = vmatpush.msra.mxu2 %v1211_v5 }
 0x86c   :  { %v1167_v6 = vsel %vm1166_vm14, %v1469_v62, %v1163_v33  ;;  %v1102_v36 = vadd.f32 %v1098_v41, %v643_v39 }
 0x86d   :  { %1241 = vmatpush.msra.mxu2 %v1210_v44  ;;  %v1198_v27 = vmul.f32 %v1167_v6, %v2044_v20  ;;  %v1093_v20 = vpop.f32.mrf.mxu0 }
 0x86e   :  { %1309 = vst.msk [vmem:[%s2183_s3 + $0x30] sm:$0xff] %vm46_vm0, %v1102_v36 }
 0x86f   :  { %v1035_v51 = vpop.f32.mrf.mxu3  ;;  %1242 = vmatpush.msra.mxu2 %v1209_v48  ;;  %v1203_v9 = vmul.f32 %v1425_v63, %v1198_v27 }
 0x870   :  { %v1036_v50 = vadd.f32 %v1035_v51, %v1006_v7 }
 0x871   :  { %v1208_v52 = vadd.f32 %v1426_v18, %v1203_v9 }
 0x872   :  { %v1099_v59 = vadd.f32 %v1093_v20, %v1036_v50 }
 0x873   :  { %1243 = vmatpush.msra.mxu2 %v1208_v52 }
 0x874   :  { %v1103_v61 = vadd.f32 %v1099_v59, %v644_v54  ;;  %1415 = vmatmul.msk.f32.vlgmr.msra.gmra.mxu2 %vm46_vm0, %v1212_v53 }
 0x876   :  { %1310 = vst.msk [vmem:[%s2183_s3 + $0x38] sm:$0xff] %vm46_vm0, %v1103_v61 }
 0x87c   :  { %1416 = vmatmul.msk.f32.gmra.mxu2 %vm46_vm0, %v1213_v0 }
 0x884   :  { %1417 = vmatmul.msk.f32.gmra.mxu2 %vm46_vm0, %v1214_v1 }
 0x88c   :  { %1418 = vmatmul.msk.f32.gmra.mxu2 %vm46_vm0, %v1215_v8 }
 0x8f7   :  { %v1245_v56 = vpop.f32.mrf.mxu2 }
 0x8f8   :  { %1419 = vmatmul.msk.f32.vlgmr.msra.gmra.mxu3 %vm46_vm0, %v1245_v56 }
 0x8ff   :  { %v1248_v10 = vpop.f32.mrf.mxu2 }
 0x900   :  { %1420 = vmatmul.msk.f32.gmra.mxu3 %vm46_vm0, %v1248_v10 }
 0x907   :  { %v1251_v11 = vpop.f32.mrf.mxu2 }
 0x908   :  { %1421 = vmatmul.msk.f32.gmra.mxu3 %vm46_vm0, %v1251_v11 }
 0x90f   :  { %v1254_v58 = vpop.f32.mrf.mxu2 }
 0x910   :  { %1422 = vmatmul.msk.f32.gmra.mxu3 %vm46_vm0, %v1254_v58 }
 0x97b   :  { %v1291_v55 = vpop.f32.mrf.mxu3 }
 0x97c   :  { %v1292_v12 = vadd.f32 %v1427_v57, %v1291_v55 }
 0x97e   :  { %1303 = vst.msk [vmem:[%s2183_s3] sm:$0xff] %vm46_vm0, %v1292_v12 }
 0x983   :  { %v1294_v13 = vpop.f32.mrf.mxu3 }
 0x984   :  { %v1295_v60 = vadd.f32 %v1427_v57, %v1294_v13 }
 0x986   :  { %1304 = vst.msk [vmem:[%s2183_s3 + $0x8] sm:$0xff] %vm46_vm0, %v1295_v60 }
 0x98b   :  { %v1297_v14 = vpop.f32.mrf.mxu3 }
 0x98c   :  { %v1298_v15 = vadd.f32 %v1427_v57, %v1297_v14 }
 0x98e   :  { %1305 = vst.msk [vmem:[%s2183_s3 + $0x10] sm:$0xff] %vm46_vm0, %v1298_v15 }
 0x993   :  { %v1300_v62 = vpop.f32.mrf.mxu3 }
 0x994   :  { %v1301_v16 = vadd.f32 %v1427_v57, %v1300_v62 }
 0x996   :  { %1306 = vst.msk [vmem:[%s2183_s3 + $0x18] sm:$0xff] %vm46_vm0, %v1301_v16 }

</bundles_post_ra>
